<compile_context>
chip_gen: v7x
topology: tpu7x:2x2x1
jax: 0.10.0
libtpu: 0.0.40
codegen_flags: <defaults>
</compile_context>

<pallas_src>
import jax
import jax.numpy as jnp
from jax import lax
from jax.experimental import pallas as pl
from jax.experimental.pallas import tpu as pltpu

# ----------------------------------------------------------------------------
# Shapes implied by the module (Linear(3680, 100) forces input (B, 100, 3)).
# ----------------------------------------------------------------------------
IN_H, IN_W = 100, 3
C1, K1H, K1W = 8, 30, 3               # conv1: Conv2d(1, 8, (30, 3), pad=0)
C2, K2H = 16, 30                      # conv2: Conv2d(8, 16, (30, 1), pad=2)
H1 = IN_H - K1H + 1                   # 71  (conv1 out height; out width == 1)
H1P = H1 + 4                          # 75  (conv2 padded height)
H2, W2OUT = H1P - K2H + 1, 5          # 46, 5 (conv2 out spatial)
N_OUT = 100
D_IN = IN_H * IN_W                    # 300
D_A1 = C1 * H1P                       # 600 (conv1 out incl. conv2's zero pad rows)
D_A2 = C2 * H2                        # 736 (conv2 out, real w==2 column only)
D_A1P, D_A2P, N_OUTP = 640, 768, 128  # lane-padded to multiples of 128
BLOCK_M = 512                         # batch tile (rows per grid step)
assert C2 * H2 * W2OUT == 3680


def _round_up(n, m):
    return ((n + m - 1) // m) * m


# ----------------------------------------------------------------------------
# Deterministic parameter init (PyTorch-style uniform bounds, PyTorch layouts).
# ----------------------------------------------------------------------------
def init_params(key):
    ks = jax.random.split(key, 6)

    def u(k, shape, fan_in):
        bound = 1.0 / jnp.sqrt(jnp.float32(fan_in))
        return jax.random.uniform(k, shape, jnp.float32, -bound, bound)

    return {
        "conv1_w": u(ks[0], (C1, 1, K1H, K1W), 1 * K1H * K1W),
        "conv1_b": u(ks[1], (C1,), 1 * K1H * K1W),
        "conv2_w": u(ks[2], (C2, C1, K2H, 1), C1 * K2H * 1),
        "conv2_b": u(ks[3], (C2,), C1 * K2H * 1),
        "out_w":   u(ks[4], (N_OUT, 3680), 3680),
        "out_b":   u(ks[5], (N_OUT,), 3680),
    }


# ----------------------------------------------------------------------------
# One-time weight folding (host side, done once at init — not in the hot path).
# ----------------------------------------------------------------------------
def fold_params(params):
    f32, hi = jnp.float32, lax.Precision.HIGHEST
    w1 = params["conv1_w"].astype(f32)      # (8, 1, 30, 3)
    b1 = params["conv1_b"].astype(f32)      # (8,)
    w2 = params["conv2_w"].astype(f32)      # (16, 8, 30, 1)
    b2 = params["conv2_b"].astype(f32)      # (16,)
    w3 = params["out_w"].astype(f32)        # (100, 3680)
    b3 = params["out_b"].astype(f32)        # (100,)

    # conv1 as a dense matmul: x_flat(B,300) @ W1d(300,600) -> a1(B,600).
    # a1 column (c*75 + r) = conv1 channel c at conv2-padded row r; pad rows
    # r in {0,1,73,74} get zero weight and zero bias (so relu gives exact 0).
    i_ = jnp.arange(K1H)[:, None, None]
    hi_ = jnp.arange(IN_H)[None, :, None]
    r_ = jnp.arange(H1P)[None, None, :]
    sel1 = ((hi_ == r_ - 2 + i_) & (r_ >= 2) & (r_ <= 2 + H1 - 1)).astype(f32)
    w1d = jnp.einsum("cij,ihr->hjcr", w1[:, 0], sel1, precision=hi)   # (100,3,8,75)
    w1d = w1d.reshape(D_IN, D_A1)
    row_valid = ((jnp.arange(H1P) >= 2) & (jnp.arange(H1P) <= 2 + H1 - 1)).astype(f32)
    b1d = (b1[:, None] * row_valid[None, :]).reshape(D_A1)

    # conv2 (real w==2 column only) as a dense matmul:
    # a1(B,600) @ W2d(600,736) -> a2(B,736), column index (co*46 + h).
    i2 = jnp.arange(K2H)[:, None, None]
    r2 = jnp.arange(H1P)[None, :, None]
    h2 = jnp.arange(H2)[None, None, :]
    sel2 = (r2 == h2 + i2).astype(f32)                                # (30,75,46)
    w2d = jnp.einsum("oci,irh->croh", w2[:, :, :, 0], sel2, precision=hi)  # (8,75,16,46)
    w2d = w2d.reshape(D_A1, D_A2)
    b2d = jnp.broadcast_to(b2[:, None], (C2, H2)).reshape(D_A2)

    # Linear: keep only the w==2 slice of out_w; fold the constant relu(b2)
    # columns (w != 2, pure padding output) into the bias.  Exact rewrite.
    w3r = w3.reshape(N_OUT, C2, H2, W2OUT)            # torch flatten order (C,H,W)
    w3d = jnp.transpose(w3r[:, :, :, 2].reshape(N_OUT, D_A2))         # (736, 100)
    pad_cols = jnp.concatenate([w3r[:, :, :, :2], w3r[:, :, :, 3:]], axis=3)
    b3d = b3 + jnp.sum(pad_cols * jax.nn.relu(b2)[None, :, None, None],
                       axis=(1, 2, 3))

    # Zero-pad every lane dimension to a multiple of 128.  Exact rewrite:
    # relu(0 + 0) = 0 for padded a1/a2 columns, zero K rows contribute nothing,
    # and padded output columns (100..127) are sliced off in the wrapper.
    w1p = jnp.zeros((D_IN, D_A1P), f32).at[:, :D_A1].set(w1d)
    b1p = jnp.zeros((D_A1P,), f32).at[:D_A1].set(b1d)
    w2p = jnp.zeros((D_A1P, D_A2P), f32).at[:D_A1, :D_A2].set(w2d)
    b2p = jnp.zeros((D_A2P,), f32).at[:D_A2].set(b2d)
    w3p = jnp.zeros((D_A2P, N_OUTP), f32).at[:D_A2, :N_OUT].set(w3d)
    b3p = jnp.zeros((N_OUTP,), f32).at[:N_OUT].set(b3d)

    bf16 = jnp.bfloat16
    return {
        "w1": w1p.astype(bf16), "b1": b1p.reshape(1, D_A1P),
        "w2": w2p.astype(bf16), "b2": b2p.reshape(1, D_A2P),
        "w3": w3p.astype(bf16), "b3": b3p.reshape(1, N_OUTP),
    }


# ----------------------------------------------------------------------------
# Fused Pallas kernel: conv1 + ReLU + conv2 + ReLU + linear, all in VMEM.
# ----------------------------------------------------------------------------
def _fused_cnn_kernel(x_ref, w1_ref, b1_ref, w2_ref, b2_ref, w3_ref, b3_ref, o_ref):
    # (tm, 300) f32 batch tile -> (tm, 128) f32 logits.  bf16 MXU operands
    # (casts are cheap VPU work hidden under the MXU), f32 accumulation and
    # f32 bias/ReLU epilogues (v5e has no bf16 VPU).
    x = x_ref[...].astype(jnp.bfloat16)                            # in-kernel cast
    a1 = jnp.dot(x, w1_ref[...], preferred_element_type=jnp.float32)
    a1 = jnp.maximum(a1 + b1_ref[...], 0.0)                        # conv1 + ReLU
    a2 = jnp.dot(a1.astype(jnp.bfloat16), w2_ref[...],
                 preferred_element_type=jnp.float32)
    a2 = jnp.maximum(a2 + b2_ref[...], 0.0)                        # conv2 + ReLU
    y = jnp.dot(a2.astype(jnp.bfloat16), w3_ref[...],
                preferred_element_type=jnp.float32)
    o_ref[...] = (y + b3_ref[...]).astype(o_ref.dtype)             # linear


def _resident_spec(shape):
    # Weights/biases never change block index: keep them VMEM-resident with a
    # single buffer (double-buffering them only wastes ~1.6 MB of VMEM).
    idx = lambda i: (0, 0)
    try:
        return pl.BlockSpec(shape, idx, pipeline_mode=pl.Buffered(1))
    except TypeError:          # older jax without pipeline_mode on BlockSpec
        return pl.BlockSpec(shape, idx)


def cnn_forward_pallas(folded, x):
    """x: (B, 100, 3) -> logits (B, 100), identical semantics to CNN.forward."""
    B = x.shape[0]
    xf = x.reshape(B, D_IN).astype(jnp.float32)    # f32 in; bf16 cast is in-kernel

    # Batch tiling: 16-row aligned (bf16 sublane packing), up to 512 rows per
    # step; keep >= 2 "parallel" grid steps when possible so both v7x
    # TensorCores get work (costs at most one extra step on v5e/v6e).
    Bp16 = _round_up(B, 16)
    tm = min(BLOCK_M, Bp16)
    if pl.cdiv(Bp16, tm) < 2 and Bp16 >= 64:
        tm = _round_up(pl.cdiv(Bp16, 2), 16)
    Bp = _round_up(B, tm)
    if Bp != B:
        xf = jnp.pad(xf, ((0, Bp - B), (0, 0)))

    out = pl.pallas_call(
        _fused_cnn_kernel,
        out_shape=jax.ShapeDtypeStruct((Bp, N_OUTP), jnp.float32),
        grid=(Bp // tm,),
        in_specs=[
            pl.BlockSpec((tm, D_IN), lambda i: (i, 0)),
            _resident_spec((D_IN, D_A1P)),
            _resident_spec((1, D_A1P)),
            _resident_spec((D_A1P, D_A2P)),
            _resident_spec((1, D_A2P)),
            _resident_spec((D_A2P, N_OUTP)),
            _resident_spec((1, N_OUTP)),
        ],
        out_specs=pl.BlockSpec((tm, N_OUTP), lambda i: (i, 0)),
        compiler_params=pltpu.CompilerParams(dimension_semantics=("parallel",)),
    )(xf, folded["w1"], folded["b1"], folded["w2"], folded["b2"],
      folded["w3"], folded["b3"])
    return out[:B, :N_OUT]


# ----------------------------------------------------------------------------
# Pure-JAX reference (straightforward convs) for in-script validation.
# ----------------------------------------------------------------------------
def cnn_forward_ref(params, x):
    x4 = x[:, None, :, :].astype(jnp.float32)
    y = lax.conv_general_dilated(x4, params["conv1_w"], (1, 1), "VALID",
                                 dimension_numbers=("NCHW", "OIHW", "NCHW"))
    y = jax.nn.relu(y + params["conv1_b"][None, :, None, None])
    y = lax.conv_general_dilated(y, params["conv2_w"], (1, 1), ((2, 2), (2, 2)),
                                 dimension_numbers=("NCHW", "OIHW", "NCHW"))
    y = jax.nn.relu(y + params["conv2_b"][None, :, None, None])
    y = y.reshape(x.shape[0], -1)
    return y @ params["out_w"].T + params["out_b"]


if __name__ == "__main__":
    key = jax.random.PRNGKey(0)
    pkey, xkey = jax.random.split(key)
    params = init_params(pkey)
    folded = fold_params(params)                 # one-time weight folding
    x = jax.random.normal(xkey, (2, IN_H, IN_W), jnp.float32)

    fwd = jax.jit(cnn_forward_pallas)
    out = fwd(folded, x)
    jax.block_until_ready(out)

    assert out.shape == (2, N_OUT), out.shape
    assert out.dtype == jnp.float32

    ref = cnn_forward_ref(params, x).astype(jnp.float32)
    err = float(jnp.max(jnp.abs(out - ref)))
    tol = 5e-2 * max(1.0, float(jnp.max(jnp.abs(ref))))   # scale-aware tolerance
    assert err < tol, f"max abs error vs reference: {err} (tol {tol})"
    print("KERNEL_OK")
</pallas_src>

<mosaic_0001>
module attributes {stable_mosaic.version = 11 : i64} {
  func.func @_fused_cnn_kernel(%arg0: i32, %arg1: memref<16x300xf32, #tpu.memory_space<vmem>>, %arg2: memref<300x640xbf16, #tpu.memory_space<vmem>>, %arg3: memref<1x640xf32, #tpu.memory_space<vmem>>, %arg4: memref<640x768xbf16, #tpu.memory_space<vmem>>, %arg5: memref<1x768xf32, #tpu.memory_space<vmem>>, %arg6: memref<768x128xbf16, #tpu.memory_space<vmem>>, %arg7: memref<1x128xf32, #tpu.memory_space<vmem>>, %arg8: memref<16x128xf32, #tpu.memory_space<vmem>>) attributes {dimension_semantics = [#tpu.dimension_semantics<parallel>], iteration_bounds = array<i64: 1>, scalar_prefetch = 0 : i64, scratch_operands = 0 : i64, tpu.core_type = #tpu.core_type<tc>, window_params = [{transform_indices = @transform_0, window_bounds = array<i64: 16, 300>}, {pipeline_mode = #tpu.pipeline_mode<synchronous>, transform_indices = @transform_1, window_bounds = array<i64: 300, 640>}, {pipeline_mode = #tpu.pipeline_mode<synchronous>, transform_indices = @transform_2, window_bounds = array<i64: 1, 640>}, {pipeline_mode = #tpu.pipeline_mode<synchronous>, transform_indices = @transform_3, window_bounds = array<i64: 640, 768>}, {pipeline_mode = #tpu.pipeline_mode<synchronous>, transform_indices = @transform_4, window_bounds = array<i64: 1, 768>}, {pipeline_mode = #tpu.pipeline_mode<synchronous>, transform_indices = @transform_5, window_bounds = array<i64: 768, 128>}, {pipeline_mode = #tpu.pipeline_mode<synchronous>, transform_indices = @transform_6, window_bounds = array<i64: 1, 128>}, {transform_indices = @transform_7, window_bounds = array<i64: 16, 128>}]} {
    %c0 = arith.constant 0 : index
    %c0_0 = arith.constant 0 : index
    %0 = vector.load %arg1[%c0, %c0_0] : memref<16x300xf32, #tpu.memory_space<vmem>>, vector<16x300xf32>
    %1 = arith.truncf %0 : vector<16x300xf32> to vector<16x300xbf16>
    %c0_1 = arith.constant 0 : index
    %c0_2 = arith.constant 0 : index
    %2 = vector.load %arg2[%c0_1, %c0_2] : memref<300x640xbf16, #tpu.memory_space<vmem>>, vector<300x640xbf16>
    %cst = arith.constant dense<0.000000e+00> : vector<16x640xf32>
    %3 = tpu.matmul %1, %2, %cst {dimension_numbers = #tpu.dot_dimension_numbers<[1], [0], [0], [1], [0, 0, 1, 1], [], []>} : vector<16x300xbf16>, vector<300x640xbf16>, vector<16x640xf32> -> vector<16x640xf32>
    %c0_3 = arith.constant 0 : index
    %c0_4 = arith.constant 0 : index
    %4 = vector.load %arg3[%c0_3, %c0_4] : memref<1x640xf32, #tpu.memory_space<vmem>>, vector<1x640xf32>
    %5 = vector.broadcast %4 : vector<1x640xf32> to vector<16x640xf32>
    %6 = arith.addf %3, %5 : vector<16x640xf32>
    %cst_5 = arith.constant 0.000000e+00 : f32
    %7 = vector.broadcast %cst_5 : f32 to vector<16x640xf32>
    %8 = arith.maximumf %6, %7 : vector<16x640xf32>
    %9 = arith.truncf %8 : vector<16x640xf32> to vector<16x640xbf16>
    %c0_6 = arith.constant 0 : index
    %c0_7 = arith.constant 0 : index
    %10 = vector.load %arg4[%c0_6, %c0_7] : memref<640x768xbf16, #tpu.memory_space<vmem>>, vector<640x768xbf16>
    %cst_8 = arith.constant dense<0.000000e+00> : vector<16x768xf32>
    %11 = tpu.matmul %9, %10, %cst_8 {dimension_numbers = #tpu.dot_dimension_numbers<[1], [0], [0], [1], [0, 0, 1, 1], [], []>} : vector<16x640xbf16>, vector<640x768xbf16>, vector<16x768xf32> -> vector<16x768xf32>
    %c0_9 = arith.constant 0 : index
    %c0_10 = arith.constant 0 : index
    %12 = vector.load %arg5[%c0_9, %c0_10] : memref<1x768xf32, #tpu.memory_space<vmem>>, vector<1x768xf32>
    %13 = vector.broadcast %12 : vector<1x768xf32> to vector<16x768xf32>
    %14 = arith.addf %11, %13 : vector<16x768xf32>
    %cst_11 = arith.constant 0.000000e+00 : f32
    %15 = vector.broadcast %cst_11 : f32 to vector<16x768xf32>
    %16 = arith.maximumf %14, %15 : vector<16x768xf32>
    %17 = arith.truncf %16 : vector<16x768xf32> to vector<16x768xbf16>
    %c0_12 = arith.constant 0 : index
    %c0_13 = arith.constant 0 : index
    %18 = vector.load %arg6[%c0_12, %c0_13] : memref<768x128xbf16, #tpu.memory_space<vmem>>, vector<768x128xbf16>
    %cst_14 = arith.constant dense<0.000000e+00> : vector<16x128xf32>
    %19 = tpu.matmul %17, %18, %cst_14 {dimension_numbers = #tpu.dot_dimension_numbers<[1], [0], [0], [1], [0, 0, 1, 1], [], []>} : vector<16x768xbf16>, vector<768x128xbf16>, vector<16x128xf32> -> vector<16x128xf32>
    %c0_15 = arith.constant 0 : index
    %c0_16 = arith.constant 0 : index
    %20 = vector.load %arg7[%c0_15, %c0_16] : memref<1x128xf32, #tpu.memory_space<vmem>>, vector<1x128xf32>
    %21 = vector.broadcast %20 : vector<1x128xf32> to vector<16x128xf32>
    %22 = arith.addf %19, %21 : vector<16x128xf32>
    %c0_17 = arith.constant 0 : index
    %c0_18 = arith.constant 0 : index
    %23 = vector.load %arg8[%c0_17, %c0_18] : memref<16x128xf32, #tpu.memory_space<vmem>>, vector<16x128xf32>
    tpu.vector_store %arg8[%c0_17, %c0_18], %22 {strides = array<i32>} : memref<16x128xf32, #tpu.memory_space<vmem>>, vector<16x128xf32>,
    return
  }
  func.func @transform_0(%arg0: i32) -> (i32, i32) {
    %c0_i32 = arith.constant 0 : i32
    %c0_i32_0 = arith.constant 0 : i32
    return %arg0, %c0_i32 : i32, i32
  }
  func.func @transform_1(%arg0: i32) -> (i32, i32) {
    %c0_i32 = arith.constant 0 : i32
    %c0_i32_0 = arith.constant 0 : i32
    %c0_i32_1 = arith.constant 0 : i32
    return %c0_i32, %c0_i32_0 : i32, i32
  }
  func.func @transform_2(%arg0: i32) -> (i32, i32) {
    %c0_i32 = arith.constant 0 : i32
    %c0_i32_0 = arith.constant 0 : i32
    %c0_i32_1 = arith.constant 0 : i32
    return %c0_i32, %c0_i32_0 : i32, i32
  }
  func.func @transform_3(%arg0: i32) -> (i32, i32) {
    %c0_i32 = arith.constant 0 : i32
    %c0_i32_0 = arith.constant 0 : i32
    %c0_i32_1 = arith.constant 0 : i32
    return %c0_i32, %c0_i32_0 : i32, i32
  }
  func.func @transform_4(%arg0: i32) -> (i32, i32) {
    %c0_i32 = arith.constant 0 : i32
    %c0_i32_0 = arith.constant 0 : i32
    %c0_i32_1 = arith.constant 0 : i32
    return %c0_i32, %c0_i32_0 : i32, i32
  }
  func.func @transform_5(%arg0: i32) -> (i32, i32) {
    %c0_i32 = arith.constant 0 : i32
    %c0_i32_0 = arith.constant 0 : i32
    %c0_i32_1 = arith.constant 0 : i32
    return %c0_i32, %c0_i32_0 : i32, i32
  }
  func.func @transform_6(%arg0: i32) -> (i32, i32) {
    %c0_i32 = arith.constant 0 : i32
    %c0_i32_0 = arith.constant 0 : i32
    %c0_i32_1 = arith.constant 0 : i32
    return %c0_i32, %c0_i32_0 : i32, i32
  }
  func.func @transform_7(%arg0: i32) -> (i32, i32) {
    %c0_i32 = arith.constant 0 : i32
    %c0_i32_0 = arith.constant 0 : i32
    return %arg0, %c0_i32 : i32, i32
  }
}

</mosaic_0001>

<bundles_post_ra>
// kernel: cnn_forward_pallas.1
= control target key start
LH: loop header
LB: loop body
LE: loop exit
PB: predicated region body
PF: predicated region fallthrough
CT: control target
= control target key end

     0   :  { %12 = vsyncpa [#allocation3], 0  ;;  %s4869_s0 = inlined_call_operand.vmem [shape: f32[16,300], index: 0, kind: input, shape index: {}]   ;;  %s4870_s1 = inlined_call_operand.hbm [shape: bf16[300,640], index: 1, kind: input, shape index: {}]   ;;  %s4871_s2 = inlined_call_operand.vmem [shape: f32[1,640], index: 2, kind: input, shape index: {}]   ;;  %s4872_s3 = inlined_call_operand.hbm [shape: bf16[640,768], index: 3, kind: input, shape index: {}]   ;;  %s4873_s4 = inlined_call_operand.vmem [shape: f32[1,768], index: 4, kind: input, shape index: {}]   ;;  %s4874_s5 = inlined_call_operand.vmem [shape: bf16[768,128], index: 5, kind: input, shape index: {}]   ;;  %s4875_s6 = inlined_call_operand.vmem [shape: f32[1,128], index: 6, kind: input, shape index: {}]   ;;  %s4876_s7 = inlined_call_operand.vmem [shape: f32[16,128], index: 7, kind: output, shape index: {}]  }
   0x1   :  { %13 = vsyncpa [#allocation5], 0  ;;  %s4523_s24 = smov [#allocation2]   ;;  %s4475_s28 = scalar_lea.hbm %s4870_s1, 12160 }
   0x2   :  { %s21_s25 = sshll.u32 %s4523_s24, 4  ;;  %p4476_p0 = scmp.ne.s32.totalorder %s4870_s1, %s4475_s28  ;;  %s22_s25 = int_to_ptr.vmem [resolvable:$true] %s21_s25 }
   0x3   :  { %p4479_p1 = scmp.lt.u32.totalorder %s4475_s28, %s4870_s1 }
   0x5   :  { %p4481_p2 = pnand %p4479_p1, %p4476_p0 }
   0x7   :  { %4484 = shalt.err (!%p4481_p2)
}
   0x8   :  { %s4485_s10 = scalar_lea.vmem %s22_s25, 12160  ;;  %p4490_p4 = scmp.lt.s32.totalorder %s22_s25, %s22_s25 }
   0x9   :  { %p4486_p3 = scmp.ne.s32.totalorder %s22_s25, %s4485_s10  ;;  %p4491_p5 = scmp.lt.s32.totalorder %s4485_s10, %s4485_s10 }
   0xb   :  { %p4492_p6 = por %p4491_p5, %p4490_p4 }
   0xd   :  { %p4493_p7 = pnand %p4492_p6, %p4486_p3 }
   0xf   :  { %4496 = shalt.err (!%p4493_p7)
}
  0x10   :  { %s4524_s11 = smov 320   ;;  %s4525_s12 = smov 20  }
  0x11   :  { %27 = dma.hbm_to_vmem [thread:$0]  %s4870_s1, 12160, %s22_s25, [#allocation3], %s4524_s11, %s4524_s11, %s4525_s12  }
  0x12   :  { %s4526_s15 = smov [#allocation4]   ;;  %s4497_s19 = scalar_lea.hbm %s4872_s3, 30720 }
  0x13   :  { %s35_s16 = sshll.u32 %s4526_s15, 4  ;;  %p4498_p8 = scmp.ne.s32.totalorder %s4872_s3, %s4497_s19  ;;  %s36_s16 = int_to_ptr.vmem [resolvable:$true] %s35_s16 }
  0x14   :  { %p4501_p9 = scmp.lt.u32.totalorder %s4497_s19, %s4872_s3 }
  0x16   :  { %p4503_p10 = pnand %p4501_p9, %p4498_p8 }
  0x18   :  { %4506 = shalt.err (!%p4503_p10)
}
  0x19   :  { %s4507_s24 = scalar_lea.vmem %s36_s16, 30720  ;;  %p4512_p12 = scmp.lt.s32.totalorder %s36_s16, %s36_s16 }
  0x1a   :  { %p4508_p11 = scmp.ne.s32.totalorder %s36_s16, %s4507_s24  ;;  %p4513_p13 = scmp.lt.s32.totalorder %s4507_s24, %s4507_s24 }
  0x1c   :  { %p4514_p0 = por %p4513_p13, %p4512_p12 }
  0x1e   :  { %p4515_p1 = pnand %p4514_p0, %p4508_p11 }
  0x20   :  { %4518 = shalt.err (!%p4515_p1)
}
  0x21   :  { %s4527_s1 = smov 384   ;;  %s4528_s25 = smov 24  }
  0x22   :  { %41 = dma.hbm_to_vmem [thread:$0]  %s4872_s3, 30720, %s36_s16, [#allocation5], %s4527_s1, %s4527_s1, %s4528_s25  }
  0x23   :  { %4519 = dma.done.wait [#allocation3], 12160  }
  0x24   :  { %4520 = vsyncadd [#allocation3], 4294955136 }
  0x25   :  { %4521 = dma.done.wait [#allocation5], 30720  }
  0x26   :  { %4522 = vsyncadd [#allocation5], 4294936576  ;;  %v3934_v0 = vld [vmem:[#allocation2 + $0x4] ss:$20 sps:$4 sm:$0xff]   ;;  %v3936_v1 = vld [vmem:[#allocation2] ss:$20 sps:$4 sm:$0xff]  }
  0x27   :  { %714 = vmatprep.subr.bf16.mxu0 %v3934_v0  ;;  %v3937_v2 = vld [vmem:[#allocation2 + $0x2c] ss:$20 sps:$4 sm:$0xff]   ;;  %v3939_v3 = vld [vmem:[#allocation2 + $0x28] ss:$20 sps:$4 sm:$0xff]   ;;  %v3942_v5 = vld [vmem:[#allocation2 + $0x50] ss:$20 sps:$4 sm:$0xff]  }
  0x28   :  { %715 = vmatpush1.bf16.msra.mxu0 %v3936_v1  ;;  %v3940_v4 = vld [vmem:[#allocation2 + $0x54] ss:$20 sps:$4 sm:$0xff]   ;;  %v3943_v6 = vld [vmem:[#allocation2 + $0x7c] ss:$20 sps:$4 sm:$0xff]   ;;  %v3945_v7 = vld [vmem:[#allocation2 + $0x78] ss:$20 sps:$4 sm:$0xff]  }
  0x29   :  { %716 = vmatprep.subr.bf16.mxu0 %v3937_v2  ;;  %v3946_v8 = vld [vmem:[#allocation2 + $0xa4] ss:$20 sps:$4 sm:$0xff]   ;;  %v3948_v9 = vld [vmem:[#allocation2 + $0xa0] ss:$20 sps:$4 sm:$0xff]   ;;  %v3951_v11 = vld [vmem:[#allocation2 + $0xc8] ss:$20 sps:$4 sm:$0xff]  }
  0x2a   :  { %v3949_v10 = vld [vmem:[#allocation2 + $0xcc] ss:$20 sps:$4 sm:$0xff]   ;;  %v3952_v12 = vld [vmem:[#allocation2 + $0xf4] ss:$20 sps:$4 sm:$0xff]   ;;  %v3954_v17 = vld [vmem:[#allocation2 + $0xf0] ss:$20 sps:$4 sm:$0xff]  }
  0x2b   :  { %v56_v13 = vld [vmem:[%s4869_s0 + $0x8] sm:$0xff]  ;;  %v59_v14 = vld [vmem:[%s4869_s0 + $0x20] sm:$0xff]  ;;  %v3955_v18 = vld [vmem:[#allocation2 + $0x11c] ss:$20 sps:$4 sm:$0xff]   ;;  %vm698_vm0 = vcmask 1045504   ;;  %vm694_vm1 = vcmask 359424  }
  0x2c   :  { %717 = vmatpush1.bf16.msra.mxu0 %v3939_v3  ;;  %v4602_v15 = vpack.c.bf16 %v59_v14, %v56_v13  ;;  %v3982_v16 = vld [vmem:[#allocation2 + $0xc] ss:$20 sps:$4 sm:$0xff]   ;;  %v3987_v19 = vld [vmem:[#allocation2 + $0x8] ss:$20 sps:$4 sm:$0xff]   ;;  %v3958_v22 = vld [vmem:[#allocation2 + $0x144] ss:$20 sps:$4 sm:$0xff]  }
  0x2d   :  { %718 = vmatprep.subr.bf16.mxu0 %v3940_v4  ;;  %800 = vmatprep.subr.bf16.mxu1 %v3982_v16  ;;  %v3988_v20 = vld [vmem:[#allocation2 + $0x34] ss:$20 sps:$4 sm:$0xff]   ;;  %v3957_v21 = vld [vmem:[#allocation2 + $0x118] ss:$20 sps:$4 sm:$0xff]   ;;  %v3993_v23 = vld [vmem:[#allocation2 + $0x30] ss:$20 sps:$4 sm:$0xff]  }
  0x2e   :  { %746 = vmatprep.mubr.bf16.mxu0 %v4602_v15  ;;  %832 = vmatprep.mubr.bf16.mxu1 %v4602_v15  ;;  %v3994_v24 = vld [vmem:[#allocation2 + $0x5c] ss:$20 sps:$4 sm:$0xff]   ;;  %v3960_v25 = vld [vmem:[#allocation2 + $0x140] ss:$20 sps:$4 sm:$0xff]   ;;  %v3998_v26 = vld [vmem:[#allocation2 + $0x58] ss:$20 sps:$4 sm:$0xff]  }
  0x2f   :  { %801 = vmatpush1.bf16.msra.mxu1 %v3987_v19  ;;  %v3961_v27 = vld [vmem:[#allocation2 + $0x16c] ss:$20 sps:$4 sm:$0xff]   ;;  %v4000_v28 = vld [vmem:[#allocation2 + $0x84] ss:$20 sps:$4 sm:$0xff]   ;;  %v3963_v29 = vld [vmem:[#allocation2 + $0x168] ss:$20 sps:$4 sm:$0xff]  }
  0x30   :  { %719 = vmatpush1.bf16.msra.mxu0 %v3942_v5  ;;  %802 = vmatprep.subr.bf16.mxu1 %v3988_v20  ;;  %v4002_v30 = vld [vmem:[#allocation2 + $0x80] ss:$20 sps:$4 sm:$0xff]   ;;  %v3966_v33 = vld [vmem:[#allocation2 + $0x190] ss:$20 sps:$4 sm:$0xff]   ;;  %v4005_v34 = vld [vmem:[#allocation2 + $0xa8] ss:$20 sps:$4 sm:$0xff]  }
  0x31   :  { %720 = vmatprep.subr.bf16.mxu0 %v3943_v6  ;;  %v3964_v31 = vld [vmem:[#allocation2 + $0x194] ss:$20 sps:$4 sm:$0xff]   ;;  %v4003_v32 = vld [vmem:[#allocation2 + $0xac] ss:$20 sps:$4 sm:$0xff]   ;;  %v3967_v35 = vld [vmem:[#allocation2 + $0x1bc] ss:$20 sps:$4 sm:$0xff]  }
  0x32   :  { %v4006_v36 = vld [vmem:[#allocation2 + $0xd4] ss:$20 sps:$4 sm:$0xff]   ;;  %v3969_v37 = vld [vmem:[#allocation2 + $0x1b8] ss:$20 sps:$4 sm:$0xff]   ;;  %v4008_v38 = vld [vmem:[#allocation2 + $0xd0] ss:$20 sps:$4 sm:$0xff]  }
  0x33   :  { %803 = vmatpush1.bf16.msra.mxu1 %v3993_v23  ;;  %v3970_v39 = vld [vmem:[#allocation2 + $0x1e4] ss:$20 sps:$4 sm:$0xff]   ;;  %v4009_v40 = vld [vmem:[#allocation2 + $0xfc] ss:$20 sps:$4 sm:$0xff]   ;;  %v3972_v41 = vld [vmem:[#allocation2 + $0x1e0] ss:$20 sps:$4 sm:$0xff]  }
  0x34   :  { %721 = vmatpush1.bf16.msra.mxu0 %v3945_v7  ;;  %804 = vmatprep.subr.bf16.mxu1 %v3994_v24  ;;  %v4011_v42 = vld [vmem:[#allocation2 + $0xf8] ss:$20 sps:$4 sm:$0xff]   ;;  %v3975_v45 = vld [vmem:[#allocation2 + $0x208] ss:$20 sps:$4 sm:$0xff]   ;;  %v4014_v47 = vld [vmem:[#allocation2 + $0x120] ss:$20 sps:$4 sm:$0xff]  }
  0x35   :  { %722 = vmatprep.subr.bf16.mxu0 %v3946_v8  ;;  %v3973_v43 = vld [vmem:[#allocation2 + $0x20c] ss:$20 sps:$4 sm:$0xff]   ;;  %v4012_v44 = vld [vmem:[#allocation2 + $0x124] ss:$20 sps:$4 sm:$0xff]   ;;  %v3976_v46 = vld [vmem:[#allocation2 + $0x234] ss:$20 sps:$4 sm:$0xff]  }
  0x36   :  { %v4015_v48 = vld [vmem:[#allocation2 + $0x14c] ss:$20 sps:$4 sm:$0xff]   ;;  %v3978_v49 = vld [vmem:[#allocation2 + $0x230] ss:$20 sps:$4 sm:$0xff]   ;;  %v4017_v51 = vld [vmem:[#allocation2 + $0x148] ss:$20 sps:$4 sm:$0xff]  }
  0x37   :  { %805 = vmatpush1.bf16.msra.mxu1 %v3998_v26  ;;  %v3979_v50 = vld [vmem:[#allocation2 + $0x25c] ss:$20 sps:$4 sm:$0xff]   ;;  %v4018_v52 = vld [vmem:[#allocation2 + $0x174] ss:$20 sps:$4 sm:$0xff]   ;;  %v3981_v53 = vld [vmem:[#allocation2 + $0x258] ss:$20 sps:$4 sm:$0xff]  }
  0x38   :  { %723 = vmatpush1.bf16.msra.mxu0 %v3948_v9  ;;  %806 = vmatprep.subr.bf16.mxu1 %v4000_v28  ;;  %v55_v54 = vld [vmem:[%s4869_s0] sm:$0xff]  ;;  %v58_v55 = vld [vmem:[%s4869_s0 + $0x18] sm:$0xff]  ;;  %v3996_v0 = vld [vmem:[#allocation2 + $0x2d4] ss:$20 sps:$4 sm:$0x3f]   ;;  %v4529_v3 = vmov 0  }
  0x39   :  { %724 = vmatprep.subr.bf16.mxu0 %v3949_v10  ;;  %v3986_v56 = vld [vmem:[#allocation2 + $0x284] ss:$20 sps:$4 sm:$0xff]   ;;  %v4021_v58 = vld [vmem:[#allocation2 + $0x19c] ss:$20 sps:$4 sm:$0xff]   ;;  %v4612_v59 = vpack.c.bf16 %v58_v55, %v55_v54  ;;  %v3984_v60 = vld [vmem:[#allocation2 + $0x280] ss:$20 sps:$4 sm:$0xff]  }
  0x3a   :  { %v4020_v57 = vld [vmem:[#allocation2 + $0x170] ss:$20 sps:$4 sm:$0xff]   ;;  %v3992_v61 = vld [vmem:[#allocation2 + $0x2ac] ss:$20 sps:$4 sm:$0xff]   ;;  %v3990_v2 = vld [vmem:[#allocation2 + $0x2a8] ss:$20 sps:$4 sm:$0xff]  }
  0x3b   :  { %807 = vmatpush1.bf16.msra.mxu1 %v4002_v30  ;;  %v4023_v62 = vld [vmem:[#allocation2 + $0x198] ss:$20 sps:$4 sm:$0xff]   ;;  %v3999_v1 = vld [vmem:[#allocation2 + $0x2d0] ss:$20 sps:$4 sm:$0x3f]   ;;  %vm4531_vm2 = vmmov 0  }
  0x3c   :  { %725 = vmatpush1.bf16.msra.mxu0 %v3951_v11  ;;  %808 = vmatprep.subr.bf16.mxu1 %v4003_v32  ;;  %v4024_v63 = vld [vmem:[#allocation2 + $0x1c4] ss:$20 sps:$4 sm:$0xff]   ;;  %v4026_v4 = vld [vmem:[#allocation2 + $0x1c0] ss:$20 sps:$4 sm:$0xff]   ;;  %v60_v7 = vld [vmem:[%s4869_s0 + $0x28] sm:$0xff]  ;;  %v700_v8 = vsel %vm698_vm0, %v3999_v1, 0 }
  0x3d   :  { %726 = vmatprep.subr.bf16.mxu0 %v3952_v12  ;;  %v4030_v5 = vld [vmem:[#allocation2 + $0x1ec] ss:$20 sps:$4 sm:$0xff]   ;;  %v57_v6 = vld [vmem:[%s4869_s0 + $0x10] sm:$0xff]  ;;  %v4032_v10 = vld [vmem:[#allocation2 + $0x1e8] ss:$20 sps:$4 sm:$0xff]  }
  0x3e   :  { %v4029_v9 = vld [vmem:[#allocation2 + $0x28c] ss:$20 sps:$4 sm:$0xff]   ;;  %v4036_v11 = vld [vmem:[#allocation2 + $0x214] ss:$20 sps:$4 sm:$0xff]   ;;  %v4624_v12 = vpack.c.bf16 %v60_v7, %v57_v6  ;;  %v4038_v16 = vld [vmem:[#allocation2 + $0x210] ss:$20 sps:$4 sm:$0xff]  }
  0x3f   :  { %809 = vmatpush1.bf16.msra.mxu1 %v4005_v34  ;;  %v4027_v13 = vld [vmem:[#allocation2 + $0x288] ss:$20 sps:$4 sm:$0xff]   ;;  %v4043_v20 = vld [vmem:[#allocation2 + $0x2d8] ss:$20 sps:$4 sm:$0x3f]  }
  0x40   :  { %727 = vmatpush1.bf16.msra.mxu0 %v3954_v17  ;;  %810 = vmatprep.subr.bf16.mxu1 %v4006_v36  ;;  %v4035_v14 = vld [vmem:[#allocation2 + $0x2b4] ss:$20 sps:$4 sm:$0xff]   ;;  %v4041_v17 = vld [vmem:[#allocation2 + $0x23c] ss:$20 sps:$4 sm:$0xff]   ;;  %v706_v23 = vsel %vm698_vm0, %v4043_v20, 0 }
  0x41   :  { %728 = vmatprep.subr.bf16.mxu0 %v3955_v18  ;;  %v4033_v18 = vld [vmem:[#allocation2 + $0x2b0] ss:$20 sps:$4 sm:$0xff]   ;;  %v4069_v26 = vld [vmem:[#allocation4 + $0x4] ss:$24 sps:$4 sm:$0xff]   ;;  %v4050_v28 = vld [vmem:[#allocation2 + $0x178] ss:$20 sps:$4 sm:$0xff]  }
  0x42   :  { %v4039_v19 = vld [vmem:[#allocation2 + $0x2dc] ss:$20 sps:$4 sm:$0x3f]   ;;  %v4075_v30 = vld [vmem:[#allocation4 + $0x34] ss:$24 sps:$4 sm:$0xff]  }
  0x43   :  { %811 = vmatpush1.bf16.msra.mxu1 %v4008_v38  ;;  %v4045_v24 = vld [vmem:[#allocation2 + $0x150] ss:$20 sps:$4 sm:$0xff]   ;;  %v4052_v32 = vld [vmem:[#allocation2 + $0x1a0] ss:$20 sps:$4 sm:$0xff]   ;;  %v4054_v36 = vld [vmem:[#allocation2 + $0x1c8] ss:$20 sps:$4 sm:$0xff]  }
  0x44   :  { %729 = vmatpush1.bf16.msra.mxu0 %v3957_v21  ;;  %812 = vmatprep.subr.bf16.mxu1 %v4009_v40  ;;  %v4044_v21 = vld [vmem:[#allocation2 + $0x238] ss:$20 sps:$4 sm:$0xff]   ;;  %v4081_v34 = vld [vmem:[#allocation4 + $0x64] ss:$24 sps:$4 sm:$0xff]   ;;  %v4056_v40 = vld [vmem:[#allocation2 + $0x1f0] ss:$20 sps:$4 sm:$0xff]  }
  0x45   :  { %730 = vmatprep.subr.bf16.mxu0 %v3958_v22  ;;  %v4046_v22 = vld [vmem:[#allocation2 + $0x264] ss:$20 sps:$4 sm:$0xff]   ;;  %v4063_v54 = vld [vmem:[#allocation2 + $0x128] ss:$20 sps:$4 sm:$0xff]  }
  0x46   :  { %v4087_v38 = vld [vmem:[#allocation4 + $0x94] ss:$24 sps:$4 sm:$0xff]   ;;  %v4109_v55 = vld [vmem:[#allocation4 + $0x150] ss:$24 sps:$4 sm:$0xff]   ;;  %v4129_v1 = vld [vmem:[#allocation4 + $0x1e4] ss:$24 sps:$4 sm:$0xff]  }
  0x47   :  { %813 = vmatpush1.bf16.msra.mxu1 %v4011_v42  ;;  %v4057_v42 = vld [vmem:[#allocation2 + $0xb0] ss:$20 sps:$4 sm:$0xff]   ;;  %v4070_v7 = vld [vmem:[#allocation4 + $0x8] ss:$24 sps:$4 sm:$0xff]  }
  0x48   :  { %731 = vmatpush1.bf16.msra.mxu0 %v3960_v25  ;;  %814 = vmatprep.subr.bf16.mxu1 %v4012_v44  ;;  %v4049_v25 = vld [vmem:[#allocation2 + $0x260] ss:$20 sps:$4 sm:$0xff]   ;;  %v4091_v44 = vld [vmem:[#allocation4 + $0xc0] ss:$24 sps:$4 sm:$0xff]   ;;  %v4135_v6 = vld [vmem:[#allocation4 + $0x214] ss:$24 sps:$4 sm:$0xff]  }
  0x49   :  { %732 = vmatprep.subr.bf16.mxu0 %v3961_v27  ;;  %v4048_v27 = vld [vmem:[#allocation2 + $0x10] ss:$20 sps:$4 sm:$0xff]  }
  0x4a   :  { %v4096_v20 = vld [vmem:[#allocation4 + $0xcc] ss:$24 sps:$4 sm:$0xff]  }
  0x4b   :  { %815 = vmatpush1.bf16.msra.mxu1 %v4014_v47  ;;  %v4060_v47 = vld [vmem:[#allocation2 + $0x240] ss:$20 sps:$4 sm:$0xff]  }
  0x4c   :  { %733 = vmatpush1.bf16.msra.mxu0 %v3963_v29  ;;  %816 = vmatprep.subr.bf16.mxu1 %v4015_v48  ;;  %v4067_v29 = vld [vmem:[#allocation4] ss:$24 sps:$4 sm:$0xff]   ;;  %v4097_v48 = vld [vmem:[#allocation4 + $0xf0] ss:$24 sps:$4 sm:$0xff]  }
  0x4d   :  { %734 = vmatprep.subr.bf16.mxu0 %v3964_v31  ;;  %v4051_v31 = vld [vmem:[#allocation2 + $0x38] ss:$20 sps:$4 sm:$0xff]  }
  0x4f   :  { %817 = vmatpush1.bf16.msra.mxu1 %v4017_v51  ;;  %v4062_v51 = vld [vmem:[#allocation2 + $0x268] ss:$20 sps:$4 sm:$0xff]  }
  0x50   :  { %735 = vmatpush1.bf16.msra.mxu0 %v3966_v33  ;;  %818 = vmatprep.subr.bf16.mxu1 %v4018_v52  ;;  %v4073_v33 = vld [vmem:[#allocation4 + $0x30] ss:$24 sps:$4 sm:$0xff]   ;;  %v4103_v52 = vld [vmem:[#allocation4 + $0x120] ss:$24 sps:$4 sm:$0xff]  }
  0x51   :  { %736 = vmatprep.subr.bf16.mxu0 %v3967_v35  ;;  %v4053_v35 = vld [vmem:[#allocation2 + $0x60] ss:$20 sps:$4 sm:$0xff]  }
  0x53   :  { %819 = vmatpush1.bf16.msra.mxu1 %v4020_v57  ;;  %v4064_v57 = vld [vmem:[#allocation2 + $0x290] ss:$20 sps:$4 sm:$0xff]  }
  0x54   :  { %737 = vmatpush1.bf16.msra.mxu0 %v3969_v37  ;;  %820 = vmatprep.subr.bf16.mxu1 %v4021_v58  ;;  %v4079_v37 = vld [vmem:[#allocation4 + $0x60] ss:$24 sps:$4 sm:$0xff]  }
  0x55   :  { %738 = vmatprep.subr.bf16.mxu0 %v3970_v39  ;;  %v4055_v39 = vld [vmem:[#allocation2 + $0x88] ss:$20 sps:$4 sm:$0xff]   ;;  %v4115_v58 = vld [vmem:[#allocation4 + $0x180] ss:$24 sps:$4 sm:$0xff]  }
  0x57   :  { %821 = vmatpush1.bf16.msra.mxu1 %v4023_v62  ;;  %v4065_v62 = vld [vmem:[#allocation2 + $0x2b8] ss:$20 sps:$4 sm:$0xff]  }
  0x58   :  { %739 = vmatpush1.bf16.msra.mxu0 %v3972_v41  ;;  %822 = vmatprep.subr.bf16.mxu1 %v4024_v63  ;;  %v4085_v41 = vld [vmem:[#allocation4 + $0x90] ss:$24 sps:$4 sm:$0xff]  }
  0x59   :  { %740 = vmatprep.subr.bf16.mxu0 %v3973_v43  ;;  %v4058_v43 = vld [vmem:[#allocation2 + $0x218] ss:$20 sps:$4 sm:$0xff]   ;;  %v4066_v63 = vld [vmem:[#allocation2 + $0x2e0] ss:$20 sps:$4 sm:$0x3f]  }
  0x5b   :  { %823 = vmatpush1.bf16.msra.mxu1 %v4026_v4  ;;  %v4127_v4 = vld [vmem:[#allocation4 + $0x1e0] ss:$24 sps:$4 sm:$0xff]  }
  0x5c   :  { %741 = vmatpush1.bf16.msra.mxu0 %v3975_v45  ;;  %824 = vmatprep.subr.bf16.mxu1 %v4030_v5  ;;  %v4099_v45 = vld [vmem:[#allocation4 + $0xf4] ss:$24 sps:$4 sm:$0xff]   ;;  %v712_v5 = vsel %vm698_vm0, %v4066_v63, 0 }
  0x5d   :  { %742 = vmatprep.subr.bf16.mxu0 %v3976_v46  ;;  %v4059_v46 = vld [vmem:[#allocation2 + $0xd8] ss:$20 sps:$4 sm:$0xff]  }
  0x5f   :  { %825 = vmatpush1.bf16.msra.mxu1 %v4032_v10  ;;  %v4076_v10 = vld [vmem:[#allocation4 + $0x38] ss:$24 sps:$4 sm:$0xff]  }
  0x60   :  { %743 = vmatpush1.bf16.msra.mxu0 %v3978_v49  ;;  %826 = vmatprep.subr.bf16.mxu1 %v4036_v11  ;;  %v4061_v49 = vld [vmem:[#allocation2 + $0x100] ss:$20 sps:$4 sm:$0xff]   ;;  %v4084_v11 = vld [vmem:[#allocation4 + $0x6c] ss:$24 sps:$4 sm:$0xff]  }
  0x61   :  { %744 = vmatprep.subr.bf16.mxu0 %v3979_v50  ;;  %v4105_v50 = vld [vmem:[#allocation4 + $0x124] ss:$24 sps:$4 sm:$0xff]  }
  0x63   :  { %827 = vmatpush1.bf16.msra.mxu1 %v4038_v16  ;;  %v4082_v16 = vld [vmem:[#allocation4 + $0x68] ss:$24 sps:$4 sm:$0xff]  }
  0x64   :  { %745 = vmatpush1.bf16.msra.mxu0 %v3981_v53  ;;  %828 = vmatprep.subr.bf16.mxu1 %v4041_v17  ;;  %v4111_v53 = vld [vmem:[#allocation4 + $0x154] ss:$24 sps:$4 sm:$0xff]  }
  0x65   :  { %757 = vmatprep.subr.bf16.mxu0 %v3986_v56  ;;  %v4117_v56 = vld [vmem:[#allocation4 + $0x184] ss:$24 sps:$4 sm:$0xff]  }
  0x66   :  { %v4090_v17 = vld [vmem:[#allocation4 + $0x9c] ss:$24 sps:$4 sm:$0xff]  }
  0x67   :  { %747 = vmatmul.mubr.bf16.vlgmr.msra.gmra.mrb[0].mxu0 %v4612_v59  ;;  %829 = vmatpush1.bf16.msra.mxu1 %v4044_v21  ;;  %v4102_v21 = vld [vmem:[#allocation4 + $0xfc] ss:$24 sps:$4 sm:$0xff]  }
  0x68   :  { %758 = vmatpush1.bf16.msra.mxu0 %v3984_v60  ;;  %789 = vmatprep.mubr.bf16.mxu0 %v4529_v3  ;;  %v4530_v60 = vmov 0.0  }
  0x69   :  { %759 = vmatprep.subr.bf16.mxu0 %v3992_v61  ;;  %830 = vmatprep.subr.bf16.mxu1 %v4046_v22  ;;  %v4123_v61 = vld [vmem:[#allocation4 + $0x1b4] ss:$24 sps:$4 sm:$0xff]   ;;  %v4100_v22 = vld [vmem:[#allocation4 + $0xf8] ss:$24 sps:$4 sm:$0xff]  }
  0x6b   :  { %831 = vmatpush1.bf16.msra.mxu1 %v4049_v25  ;;  %v4114_v25 = vld [vmem:[#allocation4 + $0x15c] ss:$24 sps:$4 sm:$0xff]  }
  0x6c   :  { %760 = vmatpush1.bf16.msra.mxu0 %v3990_v2  ;;  %2455 = vmatprep.subr.bf16.mxu1 %v4069_v26  ;;  %v4072_v2 = vld [vmem:[#allocation4 + $0xc] ss:$24 sps:$4 sm:$0xff]   ;;  %v4112_v26 = vld [vmem:[#allocation4 + $0x158] ss:$24 sps:$4 sm:$0xff]  }
  0x6d   :  { %3477 = vmatprep.subr.msk.bf16.mxu0 %vm698_vm0, %v3996_v0  ;;  %v4121_v0 = vld [vmem:[#allocation4 + $0x1b0] ss:$24 sps:$4 sm:$0xff]  }
  0x6e   :  { %833 = vmatmul.mubr.bf16.vlgmr.msra.gmra.mrb[0].mxu1 %v4612_v59 }
  0x6f   :  { %2456 = vmatpush1.bf16.msra.mxu1 %v4067_v29  ;;  %v4153_v29 = vld [vmem:[#allocation4 + $0x2a4] ss:$24 sps:$4 sm:$0xff]  }
  0x70   :  { %762 = vmatpush1.bf16.msra.mxu0 %v700_v8  ;;  %2457 = vmatprep.subr.bf16.mxu1 %v4075_v30  ;;  %v4133_v8 = vld [vmem:[#allocation4 + $0x210] ss:$24 sps:$4 sm:$0xff]   ;;  %v4126_v30 = vld [vmem:[#allocation4 + $0x1bc] ss:$24 sps:$4 sm:$0xff]  }
  0x71   :  { %843 = vmatprep.subr.bf16.mxu0 %v4029_v9  ;;  %v4141_v9 = vld [vmem:[#allocation4 + $0x244] ss:$24 sps:$4 sm:$0xff]  }
  0x73   :  { %3478 = vmatmul.mubr.msk.bf16.vlgmr.msra.gmra.mrb[0].mxu0 %vm694_vm1, %v4624_v12  ;;  %2458 = vmatpush1.bf16.msra.mxu1 %v4073_v33  ;;  %v4159_v33 = vld [vmem:[#allocation4 + $0x2d4] ss:$24 sps:$4 sm:$0xff]  }
  0x74   :  { %844 = vmatpush1.bf16.msra.mxu0 %v4027_v13  ;;  %875 = vmatprep.mubr.bf16.mxu0 %v4529_v3  ;;  %v4139_v13 = vld [vmem:[#allocation4 + $0x240] ss:$24 sps:$4 sm:$0xff]  }
  0x75   :  { %845 = vmatprep.subr.bf16.mxu0 %v4035_v14  ;;  %2459 = vmatprep.subr.bf16.mxu1 %v4081_v34  ;;  %v4147_v14 = vld [vmem:[#allocation4 + $0x274] ss:$24 sps:$4 sm:$0xff]  }
  0x76   :  { %v4132_v34 = vld [vmem:[#allocation4 + $0x1ec] ss:$24 sps:$4 sm:$0xff]  }
  0x77   :  { %2460 = vmatpush1.bf16.msra.mxu1 %v4079_v37  ;;  %v4130_v37 = vld [vmem:[#allocation4 + $0x1e8] ss:$24 sps:$4 sm:$0xff]  }
  0x78   :  { %846 = vmatpush1.bf16.msra.mxu0 %v4033_v18  ;;  %2461 = vmatprep.subr.bf16.mxu1 %v4087_v38  ;;  %v4145_v18 = vld [vmem:[#allocation4 + $0x270] ss:$24 sps:$4 sm:$0xff]   ;;  %v4138_v38 = vld [vmem:[#allocation4 + $0x21c] ss:$24 sps:$4 sm:$0xff]  }
  0x79   :  { %3479 = vmatprep.subr.msk.bf16.mxu0 %vm698_vm0, %v4039_v19  ;;  %v4088_v19 = vld [vmem:[#allocation4 + $0x98] ss:$24 sps:$4 sm:$0xff]  }
  0x7b   :  { %2462 = vmatpush1.bf16.msra.mxu1 %v4085_v41  ;;  %v4142_v41 = vld [vmem:[#allocation4 + $0x248] ss:$24 sps:$4 sm:$0xff]  }
  0x7c   :  { %848 = vmatpush1.bf16.msra.mxu0 %v706_v23  ;;  %v4108_v23 = vld [vmem:[#allocation4 + $0x12c] ss:$24 sps:$4 sm:$0xff]  }
  0x7d   :  { %3771 = vmatprep.subr.bf16.mxu0 %v4045_v24  ;;  %v4106_v24 = vld [vmem:[#allocation4 + $0x128] ss:$24 sps:$4 sm:$0xff]  }
  0x7f   :  { %3480 = vmatmul.mubr.msk.bf16.vlgmr.msra.gmra.mrb[4].mxu0 %vm694_vm1, %v4624_v12 }
  0x80   :  { %3772 = vmatpush3.bf16.msra.mxu0 %v4048_v27  ;;  %918 = vmatprep.mubr.bf16.mxu0 %v4602_v15  ;;  %v4093_v15 = vld [vmem:[#allocation4 + $0xc4] ss:$24 sps:$4 sm:$0xff]  }
  0x81   :  { %3773 = vmatprep.subr.bf16.mxu0 %v4050_v28  ;;  %2463 = vmatprep.subr.bf16.mxu1 %v4093_v15  ;;  %v4120_v27 = vld [vmem:[#allocation4 + $0x18c] ss:$24 sps:$4 sm:$0xff]   ;;  %v4118_v28 = vld [vmem:[#allocation4 + $0x188] ss:$24 sps:$4 sm:$0xff]   ;;  %v4150_v15 = vld [vmem:[#allocation4 + $0x27c] ss:$24 sps:$4 sm:$0xff]  }
  0x82   :  { %2464 = vmatpush1.bf16.msra.mxu1 %v4091_v44  ;;  %v4154_v44 = vld [vmem:[#allocation4 + $0x2a8] ss:$24 sps:$4 sm:$0xff]  }
  0x83   :  { %2465 = vmatprep.subr.bf16.mxu1 %v4099_v45  ;;  %v4162_v45 = vld [vmem:[#allocation4 + $0x2dc] ss:$24 sps:$4 sm:$0xff]  }
  0x84   :  { %3774 = vmatpush3.bf16.msra.mxu0 %v4051_v31  ;;  %v4151_v31 = vld [vmem:[#allocation4 + $0x2a0] ss:$24 sps:$4 sm:$0xff]  }
  0x85   :  { %3775 = vmatprep.subr.bf16.mxu0 %v4052_v32  ;;  %v4124_v32 = vld [vmem:[#allocation4 + $0x1b8] ss:$24 sps:$4 sm:$0xff]  }
  0x86   :  { %2466 = vmatpush1.bf16.msra.mxu1 %v4097_v48  ;;  %v180_v48 = vlaneseq }
  0x87   :  { %2467 = vmatprep.subr.bf16.mxu1 %v4105_v50 }
  0x88   :  { %3776 = vmatpush3.bf16.msra.mxu0 %v4053_v35  ;;  %v4157_v35 = vld [vmem:[#allocation4 + $0x2d0] ss:$24 sps:$4 sm:$0xff]  }
  0x89   :  { %3777 = vmatprep.subr.bf16.mxu0 %v4054_v36  ;;  %v4165_v36 = vld [vmem:[#allocation4 + $0x304] ss:$24 sps:$4 sm:$0xff]  }
  0x8a   :  { %2468 = vmatpush1.bf16.msra.mxu1 %v4103_v52 }
  0x8b   :  { %2469 = vmatprep.subr.bf16.mxu1 %v4111_v53 }
  0x8c   :  { %3778 = vmatpush3.bf16.msra.mxu0 %v4055_v39  ;;  %v4136_v39 = vld [vmem:[#allocation4 + $0x218] ss:$24 sps:$4 sm:$0xff]  }
  0x8d   :  { %3779 = vmatprep.subr.bf16.mxu0 %v4056_v40  ;;  %v4144_v40 = vld [vmem:[#allocation4 + $0x24c] ss:$24 sps:$4 sm:$0xff]  }
  0x8e   :  { %2470 = vmatpush1.bf16.msra.mxu1 %v4109_v55 }
  0x8f   :  { %2471 = vmatprep.subr.bf16.mxu1 %v4117_v56 }
  0x90   :  { %3780 = vmatpush3.bf16.msra.mxu0 %v4057_v42  ;;  %v4148_v42 = vld [vmem:[#allocation4 + $0x278] ss:$24 sps:$4 sm:$0xff]  }
  0x91   :  { %3781 = vmatprep.subr.bf16.mxu0 %v4058_v43  ;;  %v4156_v43 = vld [vmem:[#allocation4 + $0x2ac] ss:$24 sps:$4 sm:$0xff]  }
  0x92   :  { %2472 = vmatpush1.bf16.msra.mxu1 %v4115_v58 }
  0x93   :  { %2473 = vmatprep.subr.bf16.mxu1 %v4123_v61 }
  0x94   :  { %3782 = vmatpush3.bf16.msra.mxu0 %v4059_v46  ;;  %v4160_v46 = vld [vmem:[#allocation4 + $0x2d8] ss:$24 sps:$4 sm:$0xff]  }
  0x95   :  { %3783 = vmatprep.subr.bf16.mxu0 %v4060_v47  ;;  %v4168_v47 = vld [vmem:[#allocation4 + $0x30c] ss:$24 sps:$4 sm:$0xff]  }
  0x96   :  { %2474 = vmatpush1.bf16.msra.mxu1 %v4121_v0 }
  0x97   :  { %2475 = vmatprep.subr.bf16.mxu1 %v4129_v1 }
  0x98   :  { %3784 = vmatpush3.bf16.msra.mxu0 %v4061_v49  ;;  %v4639_v49 = vshrl.u32 %v180_v48, 7  ;;  %v4187_v48 = vld [vmem:[#allocation4 + $0x3c0] ss:$24 sps:$4 sm:$0xff]  }
  0x99   :  { %3785 = vmatprep.subr.bf16.mxu0 %v4062_v51  ;;  %v4645_v51 = vld [vmem:[%s4871_s2] sm:$0x1f] }
  0x9a   :  { %2476 = vmatpush1.bf16.msra.mxu1 %v4127_v4  ;;  %v182_v50 = vsub.s32 0, %v4639_v49  ;;  %v186_v52 = vsub.s32 1, %v4639_v49 }
  0x9b   :  { %2477 = vmatprep.subr.bf16.mxu1 %v4135_v6 }
  0x9c   :  { %3786 = vmatpush3.bf16.msra.mxu0 %v4063_v54  ;;  %v183_v53 = vrot.slane %v4645_v51, %v182_v50  ;;  %v187_v54 = vrot.slane %v4645_v51, %v186_v52 }
  0x9d   :  { %3863 = vmatprep.subr.bf16.mxu0 %v4530_v60 }
  0x9e   :  { %2478 = vmatpush1.bf16.msra.mxu1 %v4133_v8  ;;  %v4163_v8 = vld [vmem:[#allocation4 + $0x300] ss:$24 sps:$4 sm:$0xff]  }
  0x9f   :  { %919 = vmatmul.mubr.bf16.vlgmr.msra.gmra.mrb[8].mxu0 %v4612_v59  ;;  %v4078_v59 = vld [vmem:[#allocation4 + $0x3c] ss:$24 sps:$4 sm:$0xff]   ;;  %2479 = vmatprep.subr.bf16.mxu1 %v4141_v9  ;;  %v4166_v9 = vld [vmem:[#allocation4 + $0x308] ss:$24 sps:$4 sm:$0xff]  }
  0xa0   :  { %3864 = vmatpush3.bf16.msra.mxu0 %v4064_v57  ;;  %3869 = vmatprep.mubr.msk.bf16.mxu0 %vm4531_vm2, %v4530_v60 }
  0xa1   :  { %3865 = vmatprep.subr.bf16.mxu0 %v4530_v60 }
  0xa2   :  { %2480 = vmatpush1.bf16.msra.mxu1 %v4139_v13 }
  0xa3   :  { %2481 = vmatprep.subr.bf16.mxu1 %v4147_v14 }
  0xa4   :  { %3866 = vmatpush3.bf16.msra.mxu0 %v4065_v62 }
  0xa5   :  { %3867 = vmatprep.subr.bf16.mxu0 %v4530_v60 }
  0xa6   :  { %2482 = vmatpush1.bf16.msra.mxu1 %v4145_v18 }
  0xa7   :  { %2483 = vmatprep.subr.bf16.mxu1 %v4153_v29  ;;  %v4178_v29 = vld [vmem:[#allocation4 + $0x368] ss:$24 sps:$4 sm:$0xff]  }
  0xa8   :  { %3868 = vmatpush3.bf16.msra.mxu0 %v712_v5  ;;  %v190_v5 = vsub.s32 2, %v4639_v49 }
  0xa9   :  { %2584 = vmatprep.subr.bf16.mxu0 %v4072_v2 }
  0xaa   :  { %2484 = vmatpush1.bf16.msra.mxu1 %v4151_v31  ;;  %v191_v13 = vrot.slane %v4645_v51, %v190_v5 }
  0xab   :  { %3870 = vmatmul.mubr.msk.bf16.vlgmr.msra.gmra.mrb[12].mxu0 %vm694_vm1, %v4624_v12  ;;  %v4094_v12 = vld [vmem:[#allocation4 + $0xc8] ss:$24 sps:$4 sm:$0xff]   ;;  %2485 = vmatprep.subr.bf16.mxu1 %v4159_v33  ;;  %v4183_v33 = vld [vmem:[#allocation4 + $0x394] ss:$24 sps:$4 sm:$0xff]  }
  0xac   :  { %2585 = vmatpush1.bf16.msra.mxu0 %v4070_v7  ;;  %v194_v7 = vsub.s32 3, %v4639_v49 }
  0xad   :  { %2586 = vmatprep.subr.bf16.mxu0 %v4078_v59 }
  0xae   :  { %2486 = vmatpush1.bf16.msra.mxu1 %v4157_v35  ;;  %v195_v14 = vrot.slane %v4645_v51, %v194_v7 }
  0xaf   :  { %2498 = vmatprep.subr.bf16.mxu1 %v4165_v36 }
  0xb0   :  { %2587 = vmatpush1.bf16.msra.mxu0 %v4076_v10  ;;  %v4171_v10 = vld [vmem:[#allocation4 + $0x334] ss:$24 sps:$4 sm:$0xff]  }
  0xb1   :  { %2588 = vmatprep.subr.bf16.mxu0 %v4084_v11  ;;  %v4174_v11 = vld [vmem:[#allocation4 + $0x33c] ss:$24 sps:$4 sm:$0xff]  }
  0xb4   :  { %2589 = vmatpush1.bf16.msra.mxu0 %v4082_v16  ;;  %v4169_v16 = vld [vmem:[#allocation4 + $0x330] ss:$24 sps:$4 sm:$0xff]  }
  0xb5   :  { %2590 = vmatprep.subr.bf16.mxu0 %v4090_v17  ;;  %v4172_v17 = vld [vmem:[#allocation4 + $0x338] ss:$24 sps:$4 sm:$0xff]  }
  0xb8   :  { %2591 = vmatpush1.bf16.msra.mxu0 %v4088_v19  ;;  %v4177_v19 = vld [vmem:[#allocation4 + $0x364] ss:$24 sps:$4 sm:$0xff]  }
  0xb9   :  { %2592 = vmatprep.subr.bf16.mxu0 %v4096_v20  ;;  %v4180_v20 = vld [vmem:[#allocation4 + $0x36c] ss:$24 sps:$4 sm:$0xff]  }
  0xbc   :  { %2593 = vmatpush1.bf16.msra.mxu0 %v4094_v12 }
  0xbd   :  { %2594 = vmatprep.subr.bf16.mxu0 %v4102_v21 }
  0xc0   :  { %2595 = vmatpush1.bf16.msra.mxu0 %v4100_v22 }
  0xc1   :  { %2596 = vmatprep.subr.bf16.mxu0 %v4108_v23 }
  0xc4   :  { %2597 = vmatpush1.bf16.msra.mxu0 %v4106_v24 }
  0xc5   :  { %2598 = vmatprep.subr.bf16.mxu0 %v4114_v25 }
  0xc8   :  { %2599 = vmatpush1.bf16.msra.mxu0 %v4112_v26 }
  0xc9   :  { %2600 = vmatprep.subr.bf16.mxu0 %v4120_v27 }
  0xcc   :  { %2601 = vmatpush1.bf16.msra.mxu0 %v4118_v28  ;;  %v4175_v28 = vld [vmem:[#allocation4 + $0x360] ss:$24 sps:$4 sm:$0xff]  }
  0xcd   :  { %2602 = vmatprep.subr.bf16.mxu0 %v4126_v30 }
  0xd0   :  { %2603 = vmatpush1.bf16.msra.mxu0 %v4124_v32 }
  0xd1   :  { %2604 = vmatprep.subr.bf16.mxu0 %v4132_v34  ;;  %v4186_v34 = vld [vmem:[#allocation4 + $0x39c] ss:$24 sps:$4 sm:$0xff]  }
  0xd4   :  { %2605 = vmatpush1.bf16.msra.mxu0 %v4130_v37 }
  0xd5   :  { %2606 = vmatprep.subr.bf16.mxu0 %v4138_v38 }
  0xd8   :  { %2607 = vmatpush1.bf16.msra.mxu0 %v4136_v39 }
  0xd9   :  { %2608 = vmatprep.subr.bf16.mxu0 %v4144_v40 }
  0xdc   :  { %2609 = vmatpush1.bf16.msra.mxu0 %v4142_v41  ;;  %v4181_v41 = vld [vmem:[#allocation4 + $0x390] ss:$24 sps:$4 sm:$0xff]  }
  0xdd   :  { %2610 = vmatprep.subr.bf16.mxu0 %v4150_v15  ;;  %v4184_v15 = vld [vmem:[#allocation4 + $0x398] ss:$24 sps:$4 sm:$0xff]  }
  0xe0   :  { %2611 = vmatpush1.bf16.msra.mxu0 %v4148_v42 }
  0xe1   :  { %2612 = vmatprep.subr.bf16.mxu0 %v4156_v43  ;;  %v4189_v43 = vld [vmem:[#allocation4 + $0x3c4] ss:$24 sps:$4 sm:$0xff]  }
  0xe4   :  { %2613 = vmatpush1.bf16.msra.mxu0 %v4154_v44  ;;  %v4192_v44 = vld [vmem:[#allocation4 + $0x3cc] ss:$24 sps:$4 sm:$0xff]  }
  0xe5   :  { %2614 = vmatprep.subr.bf16.mxu0 %v4162_v45 }
  0xe8   :  { %2615 = vmatpush1.bf16.msra.mxu0 %v4160_v46 }
  0xe9   :  { %2627 = vmatprep.subr.bf16.mxu0 %v4168_v47 }
 0x141   :  { %v834_v12 = vpop.f32.mrb[0].mxu1 }
 0x142   :  { %v835_v22 = vadd.f32 %v834_v12, %v191_v13  ;;  %v836_v23 = vpop.f32.mrb[1].mxu1  ;;  %v198_v12 = vsub.s32 4, %v4639_v49 }
 0x143   :  { %v837_v25 = vadd.f32 %v836_v23, %v195_v14  ;;  %v838_v26 = vpop.f32.mrb[2].mxu1 }
 0x144   :  { %v839_v30 = vadd.f32 %v838_v26, %v191_v13  ;;  %v840_v32 = vpop.f32.mrb[3].mxu1  ;;  %v4222_v13 = vld [vmem:[#allocation4 + $0x4bc] ss:$24 sps:$4 sm:$0xff]  }
 0x145   :  { %v841_v35 = vadd.f32 %v840_v32, %v195_v14  ;;  %v4217_v14 = vld [vmem:[#allocation4 + $0x4b0] ss:$24 sps:$4 sm:$0xff]   ;;  %v4237_v32 = vld [vmem:[#allocation4 + $0x544] ss:$24 sps:$4 sm:$0xff]  }
 0x146   :  { %v791_v55 = vpop.f32.mrb[0].mxu0 }
 0x147   :  { %v3873_v56 = vadd.f32 %v791_v55, %v183_v53  ;;  %v793_v57 = vpop.f32.mrb[1].mxu0  ;;  %v4198_v55 = vld [vmem:[#allocation4 + $0x3fc] ss:$24 sps:$4 sm:$0xff]  }
 0x148   :  { %v3874_v58 = vadd.f32 %v793_v57, %v187_v54  ;;  %v795_v60 = vpop.f32.mrb[2].mxu0  ;;  %v4196_v57 = vld [vmem:[#allocation4 + $0x3f8] ss:$24 sps:$4 sm:$0xff]  }
 0x149   :  { %v3875_v61 = vadd.f32 %v795_v60, %v183_v53  ;;  %v797_v62 = vpop.f32.mrb[3].mxu0  ;;  %v968_v0 = vmax.f32 %v3873_v56, 0.0  ;;  %v4190_v53 = vld [vmem:[#allocation4 + $0x3c8] ss:$24 sps:$4 sm:$0xff]   ;;  %v4204_v60 = vld [vmem:[#allocation4 + $0x42c] ss:$24 sps:$4 sm:$0xff]  }
 0x14a   :  { %v3876_v63 = vadd.f32 %v797_v62, %v187_v54  ;;  %v969_v2 = vmax.f32 %v3874_v58, 0.0  ;;  %v4195_v54 = vld [vmem:[#allocation4 + $0x3f4] ss:$24 sps:$4 sm:$0xff]   ;;  %v4193_v56 = vld [vmem:[#allocation4 + $0x3f0] ss:$24 sps:$4 sm:$0xff]  }
 0x14b   :  { %v973_v1 = vmax.f32 %v3875_v61, 0.0  ;;  %v4201_v58 = vld [vmem:[#allocation4 + $0x424] ss:$24 sps:$4 sm:$0xff]   ;;  %v4199_v61 = vld [vmem:[#allocation4 + $0x420] ss:$24 sps:$4 sm:$0xff]  }
 0x14c   :  { %v974_v4 = vmax.f32 %v3876_v63, 0.0  ;;  %v4202_v62 = vld [vmem:[#allocation4 + $0x428] ss:$24 sps:$4 sm:$0xff]   ;;  %v4207_v63 = vld [vmem:[#allocation4 + $0x454] ss:$24 sps:$4 sm:$0xff]  }
 0x14d   :  { %v4655_v6 = vpack.c.bf16 %v973_v1, %v968_v0  ;;  %v4210_v0 = vld [vmem:[#allocation4 + $0x45c] ss:$24 sps:$4 sm:$0xff]   ;;  %v4205_v1 = vld [vmem:[#allocation4 + $0x450] ss:$24 sps:$4 sm:$0xff]  }
 0x14e   :  { %v4658_v59 = vpack.c.bf16 %v974_v4, %v969_v2  ;;  %v4208_v2 = vld [vmem:[#allocation4 + $0x458] ss:$24 sps:$4 sm:$0xff]   ;;  %v4213_v4 = vld [vmem:[#allocation4 + $0x484] ss:$24 sps:$4 sm:$0xff]  }
 0x150   :  { %2487 = vmatprep.mubr.bf16.mxu1 %v4658_v59  ;;  %2616 = vmatprep.mubr.bf16.mxu0 %v4658_v59 }
 0x151   :  { %2488 = vmatmul.mubr.bf16.vlgmr.msra.gmra.mrb[4].mxu1 %v4655_v6  ;;  %2617 = vmatmul.mubr.bf16.vlgmr.msra.gmra.mrb[16].mxu0 %v4655_v6 }
 0x152   :  { %2499 = vmatpush1.bf16.msra.mxu1 %v4163_v8  ;;  %2628 = vmatpush1.bf16.msra.mxu0 %v4166_v9  ;;  %v877_v18 = vpop.f32.mrb[4].mxu0  ;;  %v4216_v8 = vld [vmem:[#allocation4 + $0x48c] ss:$24 sps:$4 sm:$0xff]   ;;  %v4211_v9 = vld [vmem:[#allocation4 + $0x480] ss:$24 sps:$4 sm:$0xff]  }
 0x153   :  { %2500 = vmatprep.subr.bf16.mxu1 %v4171_v10  ;;  %2629 = vmatprep.subr.bf16.mxu0 %v4174_v11  ;;  %v879_v21 = vpop.f32.mrb[5].mxu0  ;;  %v878_v31 = vadd.f32 %v877_v18, %v835_v22  ;;  %v4214_v10 = vld [vmem:[#allocation4 + $0x488] ss:$24 sps:$4 sm:$0xff]   ;;  %v4219_v11 = vld [vmem:[#allocation4 + $0x4b4] ss:$24 sps:$4 sm:$0xff]  }
 0x154   :  { %v881_v24 = vpop.f32.mrb[6].mxu0  ;;  %v880_v36 = vadd.f32 %v879_v21, %v837_v25  ;;  %v4225_v18 = vld [vmem:[#allocation4 + $0x4e4] ss:$24 sps:$4 sm:$0xff]   ;;  %v4226_v25 = vld [vmem:[#allocation4 + $0x4e8] ss:$24 sps:$4 sm:$0xff]  }
 0x155   :  { %v883_v27 = vpop.f32.mrb[7].mxu0  ;;  %v970_v37 = vmax.f32 %v878_v31, 0.0  ;;  %v882_v38 = vadd.f32 %v881_v24, %v839_v30  ;;  %v4223_v24 = vld [vmem:[#allocation4 + $0x4e0] ss:$24 sps:$4 sm:$0xff]   ;;  %v4229_v30 = vld [vmem:[#allocation4 + $0x510] ss:$24 sps:$4 sm:$0xff]  }
 0x156   :  { %2501 = vmatpush1.bf16.msra.mxu1 %v4169_v16  ;;  %2630 = vmatpush1.bf16.msra.mxu0 %v4172_v17  ;;  %v971_v39 = vmax.f32 %v880_v36, 0.0  ;;  %v884_v40 = vadd.f32 %v883_v27, %v841_v35  ;;  %v4220_v16 = vld [vmem:[#allocation4 + $0x4b8] ss:$24 sps:$4 sm:$0xff]   ;;  %v4231_v27 = vld [vmem:[#allocation4 + $0x514] ss:$24 sps:$4 sm:$0xff]  }
 0x157   :  { %2502 = vmatprep.subr.bf16.mxu1 %v4177_v19  ;;  %2631 = vmatprep.subr.bf16.mxu0 %v4180_v20  ;;  %v975_v42 = vmax.f32 %v882_v38, 0.0  ;;  %v4228_v19 = vld [vmem:[#allocation4 + $0x4ec] ss:$24 sps:$4 sm:$0xff]   ;;  %v4232_v31 = vld [vmem:[#allocation4 + $0x518] ss:$24 sps:$4 sm:$0xff]  }
 0x158   :  { %v976_v45 = vmax.f32 %v884_v40, 0.0  ;;  %v4235_v36 = vld [vmem:[#allocation4 + $0x540] ss:$24 sps:$4 sm:$0xff]   ;;  %v4246_v40 = vld [vmem:[#allocation4 + $0x57c] ss:$24 sps:$4 sm:$0xff]  }
 0x159   :  { %v4670_v46 = vpack.c.bf16 %v975_v42, %v970_v37  ;;  %v4238_v37 = vld [vmem:[#allocation4 + $0x548] ss:$24 sps:$4 sm:$0xff]  }
 0x15a   :  { %2503 = vmatpush1.bf16.msra.mxu1 %v4175_v28  ;;  %2632 = vmatpush1.bf16.msra.mxu0 %v4178_v29  ;;  %v4672_v47 = vpack.c.bf16 %v976_v45, %v971_v39  ;;  %v4234_v28 = vld [vmem:[#allocation4 + $0x51c] ss:$24 sps:$4 sm:$0xff]   ;;  %v199_v29 = vrot.slane %v4645_v51, %v198_v12  ;;  %v4241_v45 = vld [vmem:[#allocation4 + $0x570] ss:$24 sps:$4 sm:$0xff]  }
 0x15b   :  { %2504 = vmatprep.subr.bf16.mxu1 %v4183_v33  ;;  %2633 = vmatprep.subr.bf16.mxu0 %v4186_v34  ;;  %v4240_v33 = vld [vmem:[#allocation4 + $0x54c] ss:$24 sps:$4 sm:$0xff]  }
 0x15c   :  { %2530 = vmatprep.mubr.bf16.mxu1 %v4672_v47  ;;  %2659 = vmatprep.mubr.bf16.mxu0 %v4672_v47  ;;  %v4243_v39 = vld [vmem:[#allocation4 + $0x574] ss:$24 sps:$4 sm:$0xff]  }
 0x15e   :  { %2505 = vmatpush1.bf16.msra.mxu1 %v4181_v41  ;;  %2634 = vmatpush1.bf16.msra.mxu0 %v4184_v15 }
 0x15f   :  { %2506 = vmatprep.subr.bf16.mxu1 %v4189_v43  ;;  %2635 = vmatprep.subr.bf16.mxu0 %v4192_v44 }
 0x162   :  { %2507 = vmatpush1.bf16.msra.mxu1 %v4187_v48  ;;  %2636 = vmatpush1.bf16.msra.mxu0 %v4190_v53  ;;  %v4244_v48 = vld [vmem:[#allocation4 + $0x578] ss:$24 sps:$4 sm:$0xff]   ;;  %v4249_v53 = vld [vmem:[#allocation4 + $0x5a4] ss:$24 sps:$4 sm:$0xff]  }
 0x163   :  { %2508 = vmatprep.subr.bf16.mxu1 %v4195_v54  ;;  %2637 = vmatprep.subr.bf16.mxu0 %v4198_v55  ;;  %v4252_v54 = vld [vmem:[#allocation4 + $0x5ac] ss:$24 sps:$4 sm:$0xff]  }
 0x166   :  { %2509 = vmatpush1.bf16.msra.mxu1 %v4193_v56  ;;  %2638 = vmatpush1.bf16.msra.mxu0 %v4196_v57  ;;  %v4247_v57 = vld [vmem:[#allocation4 + $0x5a0] ss:$24 sps:$4 sm:$0xff]  }
 0x167   :  { %2510 = vmatprep.subr.bf16.mxu1 %v4201_v58  ;;  %2639 = vmatprep.subr.bf16.mxu0 %v4204_v60  ;;  %v4250_v58 = vld [vmem:[#allocation4 + $0x5a8] ss:$24 sps:$4 sm:$0xff]   ;;  %v4255_v60 = vld [vmem:[#allocation4 + $0x5d4] ss:$24 sps:$4 sm:$0xff]  }
 0x16a   :  { %2511 = vmatpush1.bf16.msra.mxu1 %v4199_v61  ;;  %2640 = vmatpush1.bf16.msra.mxu0 %v4202_v62  ;;  %v4258_v61 = vld [vmem:[#allocation4 + $0x5dc] ss:$24 sps:$4 sm:$0xff]   ;;  %v4253_v62 = vld [vmem:[#allocation4 + $0x5d0] ss:$24 sps:$4 sm:$0xff]  }
 0x16b   :  { %2512 = vmatprep.subr.bf16.mxu1 %v4207_v63  ;;  %2641 = vmatprep.subr.bf16.mxu0 %v4210_v0  ;;  %v4256_v63 = vld [vmem:[#allocation4 + $0x5d8] ss:$24 sps:$4 sm:$0xff]   ;;  %v4261_v0 = vld [vmem:[#allocation4 + $0x604] ss:$24 sps:$4 sm:$0xff]  }
 0x16e   :  { %2513 = vmatpush1.bf16.msra.mxu1 %v4205_v1  ;;  %2642 = vmatpush1.bf16.msra.mxu0 %v4208_v2  ;;  %v4264_v1 = vld [vmem:[#allocation4 + $0x60c] ss:$24 sps:$4 sm:$0xff]   ;;  %v4259_v2 = vld [vmem:[#allocation4 + $0x600] ss:$24 sps:$4 sm:$0xff]  }
 0x16f   :  { %2514 = vmatprep.subr.bf16.mxu1 %v4213_v4  ;;  %2643 = vmatprep.subr.bf16.mxu0 %v4216_v8  ;;  %v4262_v4 = vld [vmem:[#allocation4 + $0x608] ss:$24 sps:$4 sm:$0xff]   ;;  %v4267_v8 = vld [vmem:[#allocation4 + $0x634] ss:$24 sps:$4 sm:$0xff]  }
 0x172   :  { %2515 = vmatpush1.bf16.msra.mxu1 %v4211_v9  ;;  %2644 = vmatpush1.bf16.msra.mxu0 %v4214_v10  ;;  %v3787_v17 = vpop.f32.mrb[8].mxu0  ;;  %v4270_v9 = vld [vmem:[#allocation4 + $0x63c] ss:$24 sps:$4 sm:$0xff]   ;;  %v4265_v10 = vld [vmem:[#allocation4 + $0x630] ss:$24 sps:$4 sm:$0xff]  }
 0x173   :  { %2516 = vmatprep.subr.bf16.mxu1 %v4219_v11  ;;  %2645 = vmatprep.subr.bf16.mxu0 %v4222_v13  ;;  %v3788_v20 = vpop.f32.mrb[9].mxu0  ;;  %v4268_v11 = vld [vmem:[#allocation4 + $0x638] ss:$24 sps:$4 sm:$0xff]   ;;  %v4273_v13 = vld [vmem:[#allocation4 + $0x664] ss:$24 sps:$4 sm:$0xff]  }
 0x174   :  { %v3789_v21 = vadd.f32 %v3788_v20, %v3787_v17  ;;  %v3790_v22 = vpop.f32.mrb[10].mxu0  ;;  %v4274_v17 = vld [vmem:[#allocation4 + $0x668] ss:$24 sps:$4 sm:$0xff]  }
 0x175   :  { %v3791_v23 = vpop.f32.mrb[11].mxu0  ;;  %v4277_v20 = vld [vmem:[#allocation4 + $0x690] ss:$24 sps:$4 sm:$0xff]  }
 0x176   :  { %2517 = vmatpush1.bf16.msra.mxu1 %v4217_v14  ;;  %2646 = vmatpush1.bf16.msra.mxu0 %v4220_v16  ;;  %v3792_v26 = vadd.f32 %v3791_v23, %v3790_v22  ;;  %v921_v34 = vadd.f32 %v3789_v21, %v199_v29  ;;  %v4276_v14 = vld [vmem:[#allocation4 + $0x66c] ss:$24 sps:$4 sm:$0xff]   ;;  %v4271_v16 = vld [vmem:[#allocation4 + $0x660] ss:$24 sps:$4 sm:$0xff]  }
 0x177   :  { %2518 = vmatprep.subr.bf16.mxu1 %v4225_v18  ;;  %2647 = vmatprep.subr.bf16.mxu0 %v4228_v19  ;;  %v4279_v18 = vld [vmem:[#allocation4 + $0x694] ss:$24 sps:$4 sm:$0xff]   ;;  %v4280_v21 = vld [vmem:[#allocation4 + $0x698] ss:$24 sps:$4 sm:$0xff]   ;;  %v4285_v22 = vld [vmem:[#allocation4 + $0x6c4] ss:$24 sps:$4 sm:$0xff]  }
 0x178   :  { %v924_v35 = vadd.f32 %v3792_v26, %v199_v29  ;;  %v4282_v19 = vld [vmem:[#allocation4 + $0x69c] ss:$24 sps:$4 sm:$0xff]   ;;  %v4288_v23 = vld [vmem:[#allocation4 + $0x6cc] ss:$24 sps:$4 sm:$0xff]   ;;  %v4292_v29 = vld [vmem:[#allocation4 + $0x6f8] ss:$24 sps:$4 sm:$0xff]  }
 0x179   :  { %v4291_v26 = vld [vmem:[#allocation4 + $0x6f4] ss:$24 sps:$4 sm:$0xff]  }
 0x17a   :  { %2519 = vmatpush1.bf16.msra.mxu1 %v4223_v24  ;;  %2648 = vmatpush1.bf16.msra.mxu0 %v4226_v25  ;;  %v4283_v24 = vld [vmem:[#allocation4 + $0x6c0] ss:$24 sps:$4 sm:$0xff]  }
 0x17b   :  { %2520 = vmatprep.subr.bf16.mxu1 %v4231_v27  ;;  %2649 = vmatprep.subr.bf16.mxu0 %v4234_v28  ;;  %v4286_v25 = vld [vmem:[#allocation4 + $0x6c8] ss:$24 sps:$4 sm:$0xff]   ;;  %v4294_v27 = vld [vmem:[#allocation4 + $0x6fc] ss:$24 sps:$4 sm:$0xff]  }
 0x17c   :  { %v4289_v28 = vld [vmem:[#allocation4 + $0x6f0] ss:$24 sps:$4 sm:$0xff]  }
 0x17e   :  { %2521 = vmatpush1.bf16.msra.mxu1 %v4229_v30  ;;  %2650 = vmatpush1.bf16.msra.mxu0 %v4232_v31  ;;  %v961_v38 = vpop.f32.mrb[12].mxu0  ;;  %v4297_v30 = vld [vmem:[#allocation4 + $0x724] ss:$24 sps:$4 sm:$0xff]  }
 0x17f   :  { %2522 = vmatprep.subr.bf16.mxu1 %v4237_v32  ;;  %2651 = vmatprep.subr.bf16.mxu0 %v4240_v33  ;;  %v962_v51 = vadd.f32 %v961_v38, %v921_v34  ;;  %v3871_v41 = vpop.f32.mrb[13].mxu0  ;;  %v4300_v31 = vld [vmem:[#allocation4 + $0x72c] ss:$24 sps:$4 sm:$0xff]   ;;  %v4295_v32 = vld [vmem:[#allocation4 + $0x720] ss:$24 sps:$4 sm:$0xff]  }
 0x180   :  { %v964_v15 = vpop.f32.mrb[14].mxu0  ;;  %v4298_v33 = vld [vmem:[#allocation4 + $0x728] ss:$24 sps:$4 sm:$0xff]   ;;  %v4303_v34 = vld [vmem:[#allocation4 + $0x754] ss:$24 sps:$4 sm:$0xff]  }
 0x181   :  { %v972_v42 = vmax.f32 %v962_v51, 0.0  ;;  %v965_v43 = vadd.f32 %v964_v15, %v924_v35  ;;  %v3872_v44 = vpop.f32.mrb[15].mxu0  ;;  %v4306_v35 = vld [vmem:[#allocation4 + $0x75c] ss:$24 sps:$4 sm:$0xff]   ;;  %v4310_v51 = vld [vmem:[#allocation4 + $0x40] ss:$24 sps:$4 sm:$0xff]  }
 0x182   :  { %2523 = vmatpush1.bf16.msra.mxu1 %v4235_v36  ;;  %2652 = vmatpush1.bf16.msra.mxu0 %v4238_v37  ;;  %v4301_v36 = vld [vmem:[#allocation4 + $0x750] ss:$24 sps:$4 sm:$0xff]   ;;  %v4309_v38 = vld [vmem:[#allocation4 + $0x14] ss:$24 sps:$4 sm:$0xff]  }
 0x183   :  { %2524 = vmatprep.subr.bf16.mxu1 %v4243_v39  ;;  %2653 = vmatprep.subr.bf16.mxu0 %v4246_v40  ;;  %v977_v55 = vmax.f32 %v965_v43, 0.0  ;;  %v4304_v37 = vld [vmem:[#allocation4 + $0x758] ss:$24 sps:$4 sm:$0xff]   ;;  %v4312_v40 = vld [vmem:[#allocation4 + $0x44] ss:$24 sps:$4 sm:$0xff]  }
 0x184   :  { %v4307_v39 = vld [vmem:[#allocation4 + $0x10] ss:$24 sps:$4 sm:$0xff]   ;;  %v4315_v41 = vld [vmem:[#allocation4 + $0x74] ss:$24 sps:$4 sm:$0xff]   ;;  %v4316_v43 = vld [vmem:[#allocation4 + $0xa0] ss:$24 sps:$4 sm:$0xff]  }
 0x185   :  { %v4680_v56 = vpack.c.bf16 %v977_v55, %v972_v42  ;;  %v4313_v15 = vld [vmem:[#allocation4 + $0x70] ss:$24 sps:$4 sm:$0xff]   ;;  %v4318_v42 = vld [vmem:[#allocation4 + $0xa4] ss:$24 sps:$4 sm:$0xff]   ;;  %v4321_v44 = vld [vmem:[#allocation4 + $0xd4] ss:$24 sps:$4 sm:$0xff]  }
 0x186   :  { %2525 = vmatpush1.bf16.msra.mxu1 %v4241_v45  ;;  %2654 = vmatpush1.bf16.msra.mxu0 %v4244_v48  ;;  %v4319_v45 = vld [vmem:[#allocation4 + $0xd0] ss:$24 sps:$4 sm:$0xff]   ;;  %v4324_v48 = vld [vmem:[#allocation4 + $0x104] ss:$24 sps:$4 sm:$0xff]  }
 0x187   :  { %2526 = vmatprep.subr.bf16.mxu1 %v4249_v53  ;;  %2655 = vmatprep.subr.bf16.mxu0 %v4252_v54  ;;  %v4322_v53 = vld [vmem:[#allocation4 + $0x100] ss:$24 sps:$4 sm:$0xff]   ;;  %v4327_v54 = vld [vmem:[#allocation4 + $0x134] ss:$24 sps:$4 sm:$0xff]   ;;  %v4330_v55 = vld [vmem:[#allocation4 + $0x164] ss:$24 sps:$4 sm:$0xff]  }
 0x18a   :  { %2527 = vmatpush1.bf16.msra.mxu1 %v4247_v57  ;;  %2656 = vmatpush1.bf16.msra.mxu0 %v4250_v58  ;;  %v4328_v57 = vld [vmem:[#allocation4 + $0x160] ss:$24 sps:$4 sm:$0xff]   ;;  %v4333_v58 = vld [vmem:[#allocation4 + $0x194] ss:$24 sps:$4 sm:$0xff]  }
 0x18b   :  { %2528 = vmatprep.subr.bf16.mxu1 %v4255_v60  ;;  %2657 = vmatprep.subr.bf16.mxu0 %v4258_v61  ;;  %v4331_v60 = vld [vmem:[#allocation4 + $0x190] ss:$24 sps:$4 sm:$0xff]   ;;  %v4336_v61 = vld [vmem:[#allocation4 + $0x1c4] ss:$24 sps:$4 sm:$0xff]  }
 0x18e   :  { %2529 = vmatpush1.bf16.msra.mxu1 %v4253_v62  ;;  %2658 = vmatpush1.bf16.msra.mxu0 %v4256_v63  ;;  %v4427_v62 = vld [vmem:[%s4874_s5 + $0x40] sm:$0xff]  }
 0x18f   :  { %2541 = vmatprep.subr.bf16.mxu1 %v4261_v0  ;;  %2670 = vmatprep.subr.bf16.mxu0 %v4264_v1  ;;  %v4428_v63 = vld [vmem:[%s4874_s5] sm:$0xff]   ;;  %v4429_v0 = vld [vmem:[%s4874_s5 + $0x48] sm:$0xff]   ;;  %v4334_v1 = vld [vmem:[#allocation4 + $0x1c0] ss:$24 sps:$4 sm:$0xff]  }
 0x191   :  { %2531 = vmatmul.mubr.bf16.vlgmr.msra.gmra.mrb[4].mxu1 %v4670_v46  ;;  %2660 = vmatmul.mubr.bf16.vlgmr.msra.gmra.mrb[16].mxu0 %v4670_v46 }
 0x192   :  { %2542 = vmatpush1.bf16.msra.mxu1 %v4259_v2  ;;  %2671 = vmatpush1.bf16.msra.mxu0 %v4262_v4  ;;  %v4339_v2 = vld [vmem:[#allocation4 + $0x1f4] ss:$24 sps:$4 sm:$0xff]  }
 0x193   :  { %2543 = vmatprep.subr.bf16.mxu1 %v4267_v8  ;;  %2672 = vmatprep.subr.bf16.mxu0 %v4270_v9  ;;  %v4430_v4 = vld [vmem:[%s4874_s5 + $0x8] sm:$0xff]   ;;  %v4431_v8 = vld [vmem:[%s4874_s5 + $0x50] sm:$0xff]  }
 0x194   :  { %2573 = vmatprep.mubr.bf16.mxu1 %v4529_v3  ;;  %2702 = vmatprep.mubr.bf16.mxu0 %v4529_v3  ;;  %v4337_v9 = vld [vmem:[#allocation4 + $0x1f0] ss:$24 sps:$4 sm:$0xff]  }
 0x196   :  { %2544 = vmatpush1.bf16.msra.mxu1 %v4265_v10  ;;  %2673 = vmatpush1.bf16.msra.mxu0 %v4268_v11  ;;  %v4342_v10 = vld [vmem:[#allocation4 + $0x224] ss:$24 sps:$4 sm:$0xff]  }
 0x197   :  { %2545 = vmatprep.subr.bf16.mxu1 %v4273_v13  ;;  %2674 = vmatprep.subr.bf16.mxu0 %v4276_v14  ;;  %v4432_v11 = vld [vmem:[%s4874_s5 + $0x10] sm:$0xff]   ;;  %v4433_v13 = vld [vmem:[%s4874_s5 + $0x58] sm:$0xff]  }
 0x198   :  { %v4340_v14 = vld [vmem:[#allocation4 + $0x220] ss:$24 sps:$4 sm:$0xff]  }
 0x19a   :  { %2546 = vmatpush1.bf16.msra.mxu1 %v4271_v16  ;;  %2675 = vmatpush1.bf16.msra.mxu0 %v4274_v17  ;;  %v4345_v16 = vld [vmem:[#allocation4 + $0x254] ss:$24 sps:$4 sm:$0xff]   ;;  %v4434_v17 = vld [vmem:[%s4874_s5 + $0x18] sm:$0xff]  }
 0x19b   :  { %2547 = vmatprep.subr.bf16.mxu1 %v4279_v18  ;;  %2676 = vmatprep.subr.bf16.mxu0 %v4282_v19  ;;  %v4435_v18 = vld [vmem:[%s4874_s5 + $0x60] sm:$0xff]  }
 0x19c   :  { %v4343_v19 = vld [vmem:[#allocation4 + $0x250] ss:$24 sps:$4 sm:$0xff]  }
 0x19e   :  { %2548 = vmatpush1.bf16.msra.mxu1 %v4277_v20  ;;  %2677 = vmatpush1.bf16.msra.mxu0 %v4280_v21  ;;  %v4348_v20 = vld [vmem:[#allocation4 + $0x284] ss:$24 sps:$4 sm:$0xff]   ;;  %v4436_v21 = vld [vmem:[%s4874_s5 + $0x20] sm:$0xff]  }
 0x19f   :  { %2549 = vmatprep.subr.bf16.mxu1 %v4285_v22  ;;  %2678 = vmatprep.subr.bf16.mxu0 %v4288_v23  ;;  %v4437_v22 = vld [vmem:[%s4874_s5 + $0x68] sm:$0xff]   ;;  %v4346_v23 = vld [vmem:[#allocation4 + $0x280] ss:$24 sps:$4 sm:$0xff]  }
 0x1a2   :  { %2550 = vmatpush1.bf16.msra.mxu1 %v4283_v24  ;;  %2679 = vmatpush1.bf16.msra.mxu0 %v4286_v25  ;;  %v4351_v24 = vld [vmem:[#allocation4 + $0x2b4] ss:$24 sps:$4 sm:$0xff]  }
 0x1a3   :  { %2551 = vmatprep.subr.bf16.mxu1 %v4291_v26  ;;  %2680 = vmatprep.subr.bf16.mxu0 %v4294_v27  ;;  %v4438_v25 = vld [vmem:[%s4874_s5 + $0x28] sm:$0xff]   ;;  %v4354_v27 = vld [vmem:[#allocation4 + $0x2e4] ss:$24 sps:$4 sm:$0xff]  }
 0x1a4   :  { %v4349_v26 = vld [vmem:[#allocation4 + $0x2b0] ss:$24 sps:$4 sm:$0xff]  }
 0x1a6   :  { %2552 = vmatpush1.bf16.msra.mxu1 %v4289_v28  ;;  %2681 = vmatpush1.bf16.msra.mxu0 %v4292_v29  ;;  %v4352_v28 = vld [vmem:[#allocation4 + $0x2e0] ss:$24 sps:$4 sm:$0xff]   ;;  %v4357_v29 = vld [vmem:[#allocation4 + $0x314] ss:$24 sps:$4 sm:$0xff]  }
 0x1a7   :  { %2553 = vmatprep.subr.bf16.mxu1 %v4297_v30  ;;  %2682 = vmatprep.subr.bf16.mxu0 %v4300_v31  ;;  %v4355_v30 = vld [vmem:[#allocation4 + $0x310] ss:$24 sps:$4 sm:$0xff]   ;;  %v4360_v31 = vld [vmem:[#allocation4 + $0x344] ss:$24 sps:$4 sm:$0xff]  }
 0x1aa   :  { %2554 = vmatpush1.bf16.msra.mxu1 %v4295_v32  ;;  %2683 = vmatpush1.bf16.msra.mxu0 %v4298_v33  ;;  %v4358_v32 = vld [vmem:[#allocation4 + $0x340] ss:$24 sps:$4 sm:$0xff]   ;;  %v4363_v33 = vld [vmem:[#allocation4 + $0x374] ss:$24 sps:$4 sm:$0xff]  }
 0x1ab   :  { %2555 = vmatprep.subr.bf16.mxu1 %v4303_v34  ;;  %2684 = vmatprep.subr.bf16.mxu0 %v4306_v35  ;;  %v4361_v34 = vld [vmem:[#allocation4 + $0x370] ss:$24 sps:$4 sm:$0xff]   ;;  %v4366_v35 = vld [vmem:[#allocation4 + $0x3a4] ss:$24 sps:$4 sm:$0xff]  }
 0x1ae   :  { %2556 = vmatpush1.bf16.msra.mxu1 %v4301_v36  ;;  %2685 = vmatpush1.bf16.msra.mxu0 %v4304_v37  ;;  %v4364_v36 = vld [vmem:[#allocation4 + $0x3a0] ss:$24 sps:$4 sm:$0xff]   ;;  %v4369_v37 = vld [vmem:[#allocation4 + $0x3d4] ss:$24 sps:$4 sm:$0xff]  }
 0x1af   :  { %2713 = vmatprep.subr.bf16.mxu1 %v4309_v38  ;;  %3797 = vmatprep.subr.bf16.mxu0 %v4427_v62  ;;  %v4367_v38 = vld [vmem:[#allocation4 + $0x3d0] ss:$24 sps:$4 sm:$0xff]  }
 0x1b0   :  { %v4391_v62 = vld [vmem:[#allocation4 + $0x550] ss:$24 sps:$4 sm:$0xff]  }
 0x1b1   :  { %2574 = vmatmul.mubr.bf16.vlgmr.msra.gmra.mrb[4].mxu1 %v4680_v56  ;;  %2703 = vmatmul.mubr.bf16.vlgmr.msra.gmra.mrb[16].mxu0 %v4680_v56 }
 0x1b2   :  { %2714 = vmatpush1.bf16.msra.mxu1 %v4307_v39  ;;  %2745 = vmatprep.mubr.bf16.mxu1 %v4658_v59  ;;  %v4325_v59 = vld [vmem:[#allocation4 + $0x130] ss:$24 sps:$4 sm:$0xff]   ;;  %v4372_v39 = vld [vmem:[#allocation4 + $0x404] ss:$24 sps:$4 sm:$0xff]  }
 0x1b3   :  { %2715 = vmatprep.subr.bf16.mxu1 %v4312_v40  ;;  %3798 = vmatpush3.bf16.msra.mxu0 %v4428_v63  ;;  %v4375_v40 = vld [vmem:[#allocation4 + $0x434] ss:$24 sps:$4 sm:$0xff]   ;;  %v4396_v63 = vld [vmem:[#allocation4 + $0x584] ss:$24 sps:$4 sm:$0xff]  }
 0x1b4   :  { %3799 = vmatprep.subr.bf16.mxu0 %v4429_v0  ;;  %v4394_v0 = vld [vmem:[#allocation4 + $0x580] ss:$24 sps:$4 sm:$0xff]  }
 0x1b6   :  { %2716 = vmatpush1.bf16.msra.mxu1 %v4310_v51  ;;  %v4440_v51 = vld [vmem:[%s4874_s5 + $0x30] sm:$0xff]  }
 0x1b7   :  { %2717 = vmatprep.subr.bf16.mxu1 %v4315_v41  ;;  %3800 = vmatpush3.bf16.msra.mxu0 %v4430_v4  ;;  %v4373_v41 = vld [vmem:[#allocation4 + $0x430] ss:$24 sps:$4 sm:$0xff]   ;;  %v4402_v4 = vld [vmem:[#allocation4 + $0x5e4] ss:$24 sps:$4 sm:$0xff]  }
 0x1b8   :  { %3801 = vmatprep.subr.bf16.mxu0 %v4431_v8  ;;  %v4400_v8 = vld [vmem:[#allocation4 + $0x5e0] ss:$24 sps:$4 sm:$0xff]  }
 0x1ba   :  { %2718 = vmatpush1.bf16.msra.mxu1 %v4313_v15  ;;  %v4378_v15 = vld [vmem:[#allocation4 + $0x464] ss:$24 sps:$4 sm:$0xff]  }
 0x1bb   :  { %2719 = vmatprep.subr.bf16.mxu1 %v4318_v42  ;;  %3802 = vmatpush3.bf16.msra.mxu0 %v4432_v11  ;;  %v4441_v42 = vld [vmem:[%s4874_s5 + $0x78] sm:$0xff]  }
 0x1bc   :  { %3803 = vmatprep.subr.bf16.mxu0 %v4433_v13  ;;  %v4408_v11 = vld [vmem:[#allocation4 + $0x644] ss:$24 sps:$4 sm:$0xff]   ;;  %v4406_v13 = vld [vmem:[#allocation4 + $0x640] ss:$24 sps:$4 sm:$0xff]  }
 0x1be   :  { %2720 = vmatpush1.bf16.msra.mxu1 %v4316_v43  ;;  %v4442_v43 = vld [vmem:[%s4874_s5 + $0x38] sm:$0xff]  }
 0x1bf   :  { %2721 = vmatprep.subr.bf16.mxu1 %v4321_v44  ;;  %3804 = vmatpush3.bf16.msra.mxu0 %v4434_v17  ;;  %v4376_v44 = vld [vmem:[#allocation4 + $0x460] ss:$24 sps:$4 sm:$0xff]   ;;  %v4414_v17 = vld [vmem:[#allocation4 + $0x6a4] ss:$24 sps:$4 sm:$0xff]  }
 0x1c0   :  { %3805 = vmatprep.subr.bf16.mxu0 %v4435_v18  ;;  %v4412_v18 = vld [vmem:[#allocation4 + $0x6a0] ss:$24 sps:$4 sm:$0xff]  }
 0x1c2   :  { %2722 = vmatpush1.bf16.msra.mxu1 %v4319_v45  ;;  %v4381_v45 = vld [vmem:[#allocation4 + $0x494] ss:$24 sps:$4 sm:$0xff]  }
 0x1c3   :  { %2723 = vmatprep.subr.bf16.mxu1 %v4324_v48  ;;  %3806 = vmatpush3.bf16.msra.mxu0 %v4436_v21  ;;  %v4443_v48 = vld [vmem:[%s4874_s5 + $0xc0] sm:$0xff]   ;;  %v4420_v21 = vld [vmem:[#allocation4 + $0x704] ss:$24 sps:$4 sm:$0xff]  }
 0x1c4   :  { %3807 = vmatprep.subr.bf16.mxu0 %v4437_v22  ;;  %v4423_v22 = vld [vmem:[#allocation4 + $0x734] ss:$24 sps:$4 sm:$0xff]  }
 0x1c6   :  { %2724 = vmatpush1.bf16.msra.mxu1 %v4322_v53  ;;  %v4379_v53 = vld [vmem:[#allocation4 + $0x490] ss:$24 sps:$4 sm:$0xff]  }
 0x1c7   :  { %2725 = vmatprep.subr.bf16.mxu1 %v4327_v54  ;;  %3808 = vmatpush3.bf16.msra.mxu0 %v4438_v25  ;;  %v4384_v54 = vld [vmem:[#allocation4 + $0x4c4] ss:$24 sps:$4 sm:$0xff]   ;;  %v4748_v25 = vld [vmem:[%s4873_s4] sm:$0x3f] }
 0x1ca   :  { %2726 = vmatpush1.bf16.msra.mxu1 %v4325_v59  ;;  %v4382_v59 = vld [vmem:[#allocation4 + $0x4c0] ss:$24 sps:$4 sm:$0xff]  }
 0x1cb   :  { %2727 = vmatprep.subr.bf16.mxu1 %v4330_v55  ;;  %v4387_v55 = vld [vmem:[#allocation4 + $0x4f4] ss:$24 sps:$4 sm:$0xff]  }
 0x1ce   :  { %2728 = vmatpush1.bf16.msra.mxu1 %v4328_v57  ;;  %v4385_v57 = vld [vmem:[#allocation4 + $0x4f0] ss:$24 sps:$4 sm:$0xff]  }
 0x1cf   :  { %2729 = vmatprep.subr.bf16.mxu1 %v4333_v58  ;;  %v4390_v58 = vld [vmem:[#allocation4 + $0x524] ss:$24 sps:$4 sm:$0xff]  }
 0x1d2   :  { %2730 = vmatpush1.bf16.msra.mxu1 %v4331_v60  ;;  %v4388_v60 = vld [vmem:[#allocation4 + $0x520] ss:$24 sps:$4 sm:$0xff]  }
 0x1d3   :  { %2731 = vmatprep.subr.bf16.mxu1 %v4336_v61  ;;  %v4393_v61 = vld [vmem:[#allocation4 + $0x554] ss:$24 sps:$4 sm:$0xff]  }
 0x1d6   :  { %2732 = vmatpush1.bf16.msra.mxu1 %v4334_v1  ;;  %v4399_v1 = vld [vmem:[#allocation4 + $0x5b4] ss:$24 sps:$4 sm:$0xff]  }
 0x1d7   :  { %2733 = vmatprep.subr.bf16.mxu1 %v4339_v2  ;;  %v4397_v2 = vld [vmem:[#allocation4 + $0x5b0] ss:$24 sps:$4 sm:$0xff]  }
 0x1da   :  { %2734 = vmatpush1.bf16.msra.mxu1 %v4337_v9  ;;  %v4405_v9 = vld [vmem:[#allocation4 + $0x614] ss:$24 sps:$4 sm:$0xff]  }
 0x1db   :  { %2735 = vmatprep.subr.bf16.mxu1 %v4342_v10  ;;  %v4403_v10 = vld [vmem:[#allocation4 + $0x610] ss:$24 sps:$4 sm:$0xff]  }
 0x1de   :  { %2736 = vmatpush1.bf16.msra.mxu1 %v4340_v14  ;;  %v4411_v14 = vld [vmem:[#allocation4 + $0x674] ss:$24 sps:$4 sm:$0xff]  }
 0x1df   :  { %2737 = vmatprep.subr.bf16.mxu1 %v4345_v16  ;;  %v4409_v16 = vld [vmem:[#allocation4 + $0x670] ss:$24 sps:$4 sm:$0xff]  }
 0x1e2   :  { %2738 = vmatpush1.bf16.msra.mxu1 %v4343_v19  ;;  %v4417_v19 = vld [vmem:[#allocation4 + $0x6d4] ss:$24 sps:$4 sm:$0xff]  }
 0x1e3   :  { %2739 = vmatprep.subr.bf16.mxu1 %v4348_v20  ;;  %v4415_v20 = vld [vmem:[#allocation4 + $0x6d0] ss:$24 sps:$4 sm:$0xff]  }
 0x1e6   :  { %2740 = vmatpush1.bf16.msra.mxu1 %v4346_v23  ;;  %v4426_v23 = vld [vmem:[#allocation4 + $0x764] ss:$24 sps:$4 sm:$0xff]  }
 0x1e7   :  { %2741 = vmatprep.subr.bf16.mxu1 %v4351_v24  ;;  %v4424_v24 = vld [vmem:[#allocation4 + $0x760] ss:$24 sps:$4 sm:$0xff]  }
 0x1ea   :  { %2742 = vmatpush1.bf16.msra.mxu1 %v4349_v26  ;;  %v1228_v26 = vrot.slane %v4748_v25, %v182_v50 }
 0x1eb   :  { %2743 = vmatprep.subr.bf16.mxu1 %v4354_v27  ;;  %v1236_v27 = vrot.slane %v4748_v25, %v190_v5 }
 0x1ee   :  { %2744 = vmatpush1.bf16.msra.mxu1 %v4352_v28  ;;  %v1232_v28 = vrot.slane %v4748_v25, %v186_v52 }
 0x1ef   :  { %2756 = vmatprep.subr.bf16.mxu1 %v4357_v29 }
 0x1f1   :  { %2746 = vmatmul.mubr.bf16.vlgmr.msra.gmra.mrb[8].mxu1 %v4655_v6  ;;  %v4370_v6 = vld [vmem:[#allocation4 + $0x400] ss:$24 sps:$4 sm:$0xff]  }
 0x1f2   :  { %2757 = vmatpush1.bf16.msra.mxu1 %v4355_v30  ;;  %2788 = vmatprep.mubr.bf16.mxu1 %v4672_v47  ;;  %v4439_v47 = vld [vmem:[%s4874_s5 + $0x70] sm:$0xff]  }
 0x1f3   :  { %2758 = vmatprep.subr.bf16.mxu1 %v4360_v31  ;;  %3809 = vmatprep.subr.bf16.mxu0 %v4439_v47 }
 0x1f4   :  { %3810 = vmatpush3.bf16.msra.mxu0 %v4440_v51 }
 0x1f5   :  { %3811 = vmatprep.subr.bf16.mxu0 %v4441_v42 }
 0x1f6   :  { %2759 = vmatpush1.bf16.msra.mxu1 %v4358_v32 }
 0x1f7   :  { %2760 = vmatprep.subr.bf16.mxu1 %v4363_v33 }
 0x1f8   :  { %3812 = vmatpush3.bf16.msra.mxu0 %v4442_v43 }
 0x1f9   :  { %3819 = vmatprep.subr.bf16.mxu0 %v4443_v48 }
 0x1fa   :  { %2761 = vmatpush1.bf16.msra.mxu1 %v4361_v34 }
 0x1fb   :  { %2762 = vmatprep.subr.bf16.mxu1 %v4366_v35 }
 0x1fe   :  { %2763 = vmatpush1.bf16.msra.mxu1 %v4364_v36 }
 0x1ff   :  { %2764 = vmatprep.subr.bf16.mxu1 %v4369_v37 }
 0x202   :  { %2765 = vmatpush1.bf16.msra.mxu1 %v4367_v38 }
 0x203   :  { %2766 = vmatprep.subr.bf16.mxu1 %v4372_v39 }
 0x206   :  { %2767 = vmatpush1.bf16.msra.mxu1 %v4370_v6 }
 0x207   :  { %2768 = vmatprep.subr.bf16.mxu1 %v4375_v40 }
 0x20a   :  { %2769 = vmatpush1.bf16.msra.mxu1 %v4373_v41 }
 0x20b   :  { %2770 = vmatprep.subr.bf16.mxu1 %v4378_v15 }
 0x20e   :  { %2771 = vmatpush1.bf16.msra.mxu1 %v4376_v44 }
 0x20f   :  { %2772 = vmatprep.subr.bf16.mxu1 %v4381_v45 }
 0x212   :  { %2773 = vmatpush1.bf16.msra.mxu1 %v4379_v53 }
 0x213   :  { %2774 = vmatprep.subr.bf16.mxu1 %v4384_v54 }
 0x216   :  { %2775 = vmatpush1.bf16.msra.mxu1 %v4382_v59  ;;  %v4444_v59 = vld [vmem:[%s4874_s5 + $0x80] sm:$0xff]  }
 0x217   :  { %2776 = vmatprep.subr.bf16.mxu1 %v4387_v55  ;;  %v4445_v55 = vld [vmem:[%s4874_s5 + $0xc8] sm:$0xff]  }
 0x21a   :  { %2777 = vmatpush1.bf16.msra.mxu1 %v4385_v57  ;;  %v4446_v57 = vld [vmem:[%s4874_s5 + $0x88] sm:$0xff]  }
 0x21b   :  { %2778 = vmatprep.subr.bf16.mxu1 %v4390_v58  ;;  %v4447_v58 = vld [vmem:[%s4874_s5 + $0xd0] sm:$0xff]  }
 0x21e   :  { %2779 = vmatpush1.bf16.msra.mxu1 %v4388_v60  ;;  %v4448_v60 = vld [vmem:[%s4874_s5 + $0x90] sm:$0xff]  }
 0x21f   :  { %2780 = vmatprep.subr.bf16.mxu1 %v4393_v61  ;;  %v4449_v61 = vld [vmem:[%s4874_s5 + $0xd8] sm:$0xff]  }
 0x222   :  { %2781 = vmatpush1.bf16.msra.mxu1 %v4391_v62  ;;  %v4450_v62 = vld [vmem:[%s4874_s5 + $0x98] sm:$0xff]  }
 0x223   :  { %2782 = vmatprep.subr.bf16.mxu1 %v4396_v63  ;;  %v4451_v63 = vld [vmem:[%s4874_s5 + $0xe0] sm:$0xff]  }
 0x226   :  { %2783 = vmatpush1.bf16.msra.mxu1 %v4394_v0  ;;  %v4452_v0 = vld [vmem:[%s4874_s5 + $0xa0] sm:$0xff]  }
 0x227   :  { %2784 = vmatprep.subr.bf16.mxu1 %v4399_v1  ;;  %v4453_v1 = vld [vmem:[%s4874_s5 + $0xe8] sm:$0xff]  }
 0x22a   :  { %2785 = vmatpush1.bf16.msra.mxu1 %v4397_v2  ;;  %v4454_v2 = vld [vmem:[%s4874_s5 + $0xa8] sm:$0xff]  }
 0x22b   :  { %2786 = vmatprep.subr.bf16.mxu1 %v4402_v4  ;;  %v4455_v4 = vld [vmem:[%s4874_s5 + $0xf0] sm:$0xff]  }
 0x22e   :  { %2787 = vmatpush1.bf16.msra.mxu1 %v4400_v8  ;;  %v4456_v8 = vld [vmem:[%s4874_s5 + $0xb0] sm:$0xff]  }
 0x22f   :  { %2799 = vmatprep.subr.bf16.mxu1 %v4405_v9  ;;  %v4457_v9 = vld [vmem:[%s4874_s5 + $0xf8] sm:$0xff]  }
 0x231   :  { %2789 = vmatmul.mubr.bf16.vlgmr.msra.gmra.mrb[8].mxu1 %v4670_v46  ;;  %v4418_v46 = vld [vmem:[#allocation4 + $0x700] ss:$24 sps:$4 sm:$0xff]  }
 0x232   :  { %2800 = vmatpush1.bf16.msra.mxu1 %v4403_v10  ;;  %2831 = vmatprep.mubr.bf16.mxu1 %v4529_v3  ;;  %v4421_v3 = vld [vmem:[#allocation4 + $0x730] ss:$24 sps:$4 sm:$0xff]   ;;  %v4458_v10 = vld [vmem:[%s4874_s5 + $0xb8] sm:$0xff]  }
 0x233   :  { %2801 = vmatprep.subr.bf16.mxu1 %v4408_v11  ;;  %v4459_v11 = vld [vmem:[%s4874_s5 + $0x140] sm:$0xff]  }
 0x236   :  { %2802 = vmatpush1.bf16.msra.mxu1 %v4406_v13  ;;  %v4460_v13 = vld [vmem:[%s4874_s5 + $0x100] sm:$0xff]  }
 0x237   :  { %2803 = vmatprep.subr.bf16.mxu1 %v4411_v14  ;;  %v4461_v14 = vld [vmem:[%s4874_s5 + $0x148] sm:$0xff]  }
 0x23a   :  { %2804 = vmatpush1.bf16.msra.mxu1 %v4409_v16  ;;  %v4462_v16 = vld [vmem:[%s4874_s5 + $0x108] sm:$0xff]  }
 0x23b   :  { %2805 = vmatprep.subr.bf16.mxu1 %v4414_v17  ;;  %v4463_v17 = vld [vmem:[%s4874_s5 + $0x150] sm:$0xff]  }
 0x23e   :  { %2806 = vmatpush1.bf16.msra.mxu1 %v4412_v18  ;;  %v4464_v18 = vld [vmem:[%s4874_s5 + $0x110] sm:$0xff]  }
 0x23f   :  { %2807 = vmatprep.subr.bf16.mxu1 %v4417_v19  ;;  %v4465_v19 = vld [vmem:[%s4874_s5 + $0x158] sm:$0xff]  }
 0x242   :  { %2808 = vmatpush1.bf16.msra.mxu1 %v4415_v20  ;;  %v4466_v20 = vld [vmem:[%s4874_s5 + $0x118] sm:$0xff]  }
 0x243   :  { %2809 = vmatprep.subr.bf16.mxu1 %v4420_v21  ;;  %v4467_v21 = vld [vmem:[%s4874_s5 + $0x160] sm:$0xff]  }
 0x246   :  { %2810 = vmatpush1.bf16.msra.mxu1 %v4418_v46  ;;  %v4468_v46 = vld [vmem:[%s4874_s5 + $0x120] sm:$0xff]  }
 0x247   :  { %2811 = vmatprep.subr.bf16.mxu1 %v4423_v22  ;;  %v4469_v22 = vld [vmem:[%s4874_s5 + $0x168] sm:$0xff]  }
 0x24a   :  { %2812 = vmatpush1.bf16.msra.mxu1 %v4421_v3  ;;  %v4470_v3 = vld [vmem:[%s4874_s5 + $0x128] sm:$0xff]  }
 0x24b   :  { %2813 = vmatprep.subr.bf16.mxu1 %v4426_v23  ;;  %v4471_v23 = vld [vmem:[%s4874_s5 + $0x170] sm:$0xff]  }
 0x24e   :  { %2814 = vmatpush1.bf16.msra.mxu1 %v4424_v24  ;;  %v4472_v24 = vld [vmem:[%s4874_s5 + $0x130] sm:$0xff]  }
 0x251   :  { %2832 = vmatmul.mubr.bf16.vlgmr.msra.gmra.mrb[8].mxu1 %v4680_v56  ;;  %v1240_v56 = vrot.slane %v4748_v25, %v194_v7 }
 0x284   :  { %v2575_v29 = vpop.f32.mrb[4].mxu1  ;;  %v2704_v30 = vpop.f32.mrb[16].mxu0 }
 0x285   :  { %v3885_v31 = vadd.f32 %v2575_v29, %v1228_v26  ;;  %v3889_v32 = vadd.f32 %v2704_v30, %v1236_v27  ;;  %v2577_v33 = vpop.f32.mrb[5].mxu1  ;;  %v2706_v34 = vpop.f32.mrb[17].mxu0 }
 0x286   :  { %v3886_v35 = vadd.f32 %v2577_v33, %v1232_v28  ;;  %v3890_v50 = vadd.f32 %v2706_v34, %v1240_v56  ;;  %v2579_v36 = vpop.f32.mrb[6].mxu1  ;;  %v2708_v37 = vpop.f32.mrb[18].mxu0 }
 0x287   :  { %v3887_v38 = vadd.f32 %v2579_v36, %v1228_v26  ;;  %v3891_v5 = vadd.f32 %v2708_v37, %v1236_v27  ;;  %v2581_v39 = vpop.f32.mrb[7].mxu1  ;;  %v2710_v6 = vpop.f32.mrb[19].mxu0  ;;  %v2842_v47 = vmax.f32 %v3885_v31, 0.0  ;;  %v2844_v51 = vmax.f32 %v3889_v32, 0.0  ;;  %v4473_v26 = vld [vmem:[%s4874_s5 + $0x178] sm:$0xff]  }
 0x288   :  { %v3888_v40 = vadd.f32 %v2581_v39, %v1232_v28  ;;  %v3892_v52 = vadd.f32 %v2710_v6, %v1240_v56  ;;  %v2843_v15 = vmax.f32 %v3886_v35, 0.0  ;;  %v2845_v42 = vmax.f32 %v3890_v50, 0.0  ;;  %v4474_v27 = vld [vmem:[%s4874_s5 + $0x138] sm:$0xff]  }
 0x289   :  { %v2848_v41 = vmax.f32 %v3887_v38, 0.0  ;;  %v2850_v7 = vmax.f32 %v3891_v5, 0.0  ;;  %v1247_v28 = vsub.s32 5, %v4639_v49  ;;  %v1244_v56 = vrot.slane %v4748_v25, %v198_v12 }
 0x28a   :  { %v2849_v43 = vmax.f32 %v3888_v40, 0.0  ;;  %v2851_v44 = vmax.f32 %v3892_v52, 0.0 }
 0x28b   :  { %v2854_v45 = vpack.c.bf16 %v2848_v41, %v2842_v47  ;;  %v2856_v48 = vpack.c.bf16 %v2850_v7, %v2844_v51  ;;  %v1248_v29 = vrot.slane %v4748_v25, %v1247_v28  ;;  %v3722_v41 = vld [vmem:[%s4875_s6] ss:$0 sm:$0xff] }
 0x28c   :  { %v2855_v53 = vpack.c.bf16 %v2849_v43, %v2843_v15  ;;  %v2857_v54 = vpack.c.bf16 %v2851_v44, %v2845_v42 }
 0x28e   :  { %3283 = vmatprep.mubr.bf16.mxu0 %v2855_v53 }
 0x28f   :  { %3284 = vmatmul.mubr.bf16.vlgmr.msra.gmra.mrb[20].mxu0 %v2854_v45 }
 0x290   :  { %3820 = vmatpush3.bf16.msra.mxu0 %v4444_v59  ;;  %3324 = vmatprep.mubr.bf16.mxu0 %v2857_v54 }
 0x291   :  { %3821 = vmatprep.subr.bf16.mxu0 %v4445_v55 }
 0x294   :  { %3822 = vmatpush3.bf16.msra.mxu0 %v4446_v57 }
 0x295   :  { %3823 = vmatprep.subr.bf16.mxu0 %v4447_v58 }
 0x298   :  { %3824 = vmatpush3.bf16.msra.mxu0 %v4448_v60 }
 0x299   :  { %3825 = vmatprep.subr.bf16.mxu0 %v4449_v61 }
 0x29c   :  { %3826 = vmatpush3.bf16.msra.mxu0 %v4450_v62 }
 0x29d   :  { %3827 = vmatprep.subr.bf16.mxu0 %v4451_v63 }
 0x2a0   :  { %3828 = vmatpush3.bf16.msra.mxu0 %v4452_v0 }
 0x2a1   :  { %3829 = vmatprep.subr.bf16.mxu0 %v4453_v1 }
 0x2a4   :  { %3830 = vmatpush3.bf16.msra.mxu0 %v4454_v2 }
 0x2a5   :  { %3831 = vmatprep.subr.bf16.mxu0 %v4455_v4 }
 0x2a8   :  { %3832 = vmatpush3.bf16.msra.mxu0 %v4456_v8 }
 0x2a9   :  { %3833 = vmatprep.subr.bf16.mxu0 %v4457_v9 }
 0x2ac   :  { %3834 = vmatpush3.bf16.msra.mxu0 %v4458_v10 }
 0x2ad   :  { %3841 = vmatprep.subr.bf16.mxu0 %v4459_v11 }
 0x2af   :  { %3325 = vmatmul.mubr.bf16.vlgmr.msra.gmra.mrb[24].mxu0 %v2856_v48 }
 0x2b0   :  { %3842 = vmatpush3.bf16.msra.mxu0 %v4460_v13 }
 0x2b1   :  { %3843 = vmatprep.subr.bf16.mxu0 %v4461_v14 }
 0x2b4   :  { %3844 = vmatpush3.bf16.msra.mxu0 %v4462_v16 }
 0x2b5   :  { %3845 = vmatprep.subr.bf16.mxu0 %v4463_v17 }
 0x2b8   :  { %3846 = vmatpush3.bf16.msra.mxu0 %v4464_v18 }
 0x2b9   :  { %3847 = vmatprep.subr.bf16.mxu0 %v4465_v19 }
 0x2bc   :  { %3848 = vmatpush3.bf16.msra.mxu0 %v4466_v20 }
 0x2bd   :  { %3849 = vmatprep.subr.bf16.mxu0 %v4467_v21 }
 0x2c0   :  { %3850 = vmatpush3.bf16.msra.mxu0 %v4468_v46 }
 0x2c1   :  { %3851 = vmatprep.subr.bf16.mxu0 %v4469_v22 }
 0x2c4   :  { %3852 = vmatpush3.bf16.msra.mxu0 %v4470_v3 }
 0x2c5   :  { %3853 = vmatprep.subr.bf16.mxu0 %v4471_v23 }
 0x2c8   :  { %3854 = vmatpush3.bf16.msra.mxu0 %v4472_v24 }
 0x2c9   :  { %3855 = vmatprep.subr.bf16.mxu0 %v4473_v26 }
 0x2cc   :  { %3856 = vmatpush3.bf16.msra.mxu0 %v4474_v27 }
 0x324   :  { %v2833_v30 = vpop.f32.mrb[8].mxu1 }
 0x325   :  { %v3893_v31 = vadd.f32 %v2833_v30, %v1244_v56  ;;  %v2835_v32 = vpop.f32.mrb[9].mxu1 }
 0x326   :  { %v3894_v33 = vadd.f32 %v2835_v32, %v1248_v29  ;;  %v2837_v34 = vpop.f32.mrb[10].mxu1 }
 0x327   :  { %v3895_v35 = vadd.f32 %v2837_v34, %v1244_v56  ;;  %v2839_v50 = vpop.f32.mrb[11].mxu1  ;;  %v2846_v37 = vmax.f32 %v3893_v31, 0.0 }
 0x328   :  { %v3896_v36 = vadd.f32 %v2839_v50, %v1248_v29  ;;  %v2847_v5 = vmax.f32 %v3894_v33, 0.0 }
 0x329   :  { %v2852_v38 = vmax.f32 %v3895_v35, 0.0 }
 0x32a   :  { %v2853_v39 = vmax.f32 %v3896_v36, 0.0 }
 0x32b   :  { %v2858_v6 = vpack.c.bf16 %v2852_v38, %v2846_v37 }
 0x32c   :  { %v2859_v40 = vpack.c.bf16 %v2853_v39, %v2847_v5 }
 0x32e   :  { %3365 = vmatprep.mubr.bf16.mxu0 %v2859_v40 }
 0x32f   :  { %3366 = vmatmul.mubr.bf16.vlgmr.msra.gmra.mrb[28].mxu0 %v2858_v6 }
 0x362   :  { %v3813_v49 = vpop.f32.mrb[20].mxu0 }
 0x363   :  { %v3814_v12 = vpop.f32.mrb[21].mxu0 }
 0x364   :  { %v3815_v52 = vadd.f32 %v3814_v12, %v3813_v49  ;;  %v3816_v25 = vpop.f32.mrb[22].mxu0 }
 0x365   :  { %v3817_v47 = vpop.f32.mrb[23].mxu0 }
 0x366   :  { %v3818_v51 = vadd.f32 %v3817_v47, %v3816_v25  ;;  %v3286_v42 = vadd.f32 %v3815_v52, %v3722_v41 }
 0x368   :  { %v3289_v48 = vadd.f32 %v3818_v51, %v3722_v41 }
 0x382   :  { %v3835_v7 = vpop.f32.mrb[24].mxu0 }
 0x383   :  { %v3836_v15 = vpop.f32.mrb[25].mxu0 }
 0x384   :  { %v3837_v43 = vadd.f32 %v3836_v15, %v3835_v7  ;;  %v3838_v44 = vpop.f32.mrb[26].mxu0 }
 0x385   :  { %v3839_v45 = vpop.f32.mrb[27].mxu0 }
 0x386   :  { %v3327_v53 = vadd.f32 %v3837_v43, %v3286_v42  ;;  %v3840_v54 = vadd.f32 %v3839_v45, %v3838_v44 }
 0x388   :  { %v3330_v59 = vadd.f32 %v3840_v54, %v3289_v48 }
 0x402   :  { %v3857_v55 = vpop.f32.mrb[28].mxu0 }
 0x403   :  { %v3858_v57 = vpop.f32.mrb[29].mxu0 }
 0x404   :  { %v3859_v58 = vadd.f32 %v3858_v57, %v3857_v55  ;;  %v3860_v60 = vpop.f32.mrb[30].mxu0 }
 0x405   :  { %v3861_v61 = vpop.f32.mrb[31].mxu0 }
 0x406   :  { %v3368_v62 = vadd.f32 %v3859_v58, %v3327_v53  ;;  %v3862_v63 = vadd.f32 %v3861_v61, %v3860_v60 }
 0x408   :  { %3374 = vst [vmem:[%s4876_s7] sm:$0xff] %v3368_v62  ;;  %v3371_v0 = vadd.f32 %v3862_v63, %v3330_v59 }
 0x40a   :  { %3375 = vst [vmem:[%s4876_s7 + $0x8] sm:$0xff] %v3371_v0 }
 0x40b   :  { %3380 = vsyncpa [#allocation3], 1 }
 0x40c   :  { %3381 = vsyncpa [#allocation5], 1 }

</bundles_post_ra>
